<compile_context>
chip_gen: v5e
topology: v5e:2x2
jax: 0.10.0
libtpu: 0.0.40
codegen_flags: <defaults>
</compile_context>

<pallas_src>
import functools

import jax
import jax.numpy as jnp
import numpy as np
from jax.experimental import pallas as pl
from jax.experimental.pallas import tpu as pltpu

NEG_SLOPE = 0.01  # torch.nn.LeakyReLU default negative_slope


# ----------------------------- in-kernel helpers ----------------------------

def _leaky_relu(x):
    return jnp.where(x >= 0, x, NEG_SLOPE * x)


# ------------------------------- fused kernel -------------------------------

def _actor_fused_kernel(
        x_ref,
        w1a_ref, b1a_ref, w2a_ref, b2a_ref, wra_ref, bra_ref,   # block 0 (proj res)
        w1b_ref, b1b_ref, w2b_ref, b2b_ref,                     # block 1 (identity)
        w1c_ref, b1c_ref, w2c_ref, b2c_ref,                     # block 2 (identity)
        w1d_ref, b1d_ref, w2d_ref, b2d_ref, wrd_ref, brd_ref,   # block 3 (proj res)
        wenc_ref, benc_ref, wl1_ref, bl1_ref, wl2_ref, bl2_ref, wl3_ref, bl3_ref,
        o_ref,
        *, dilations, ksize, seq_len, batch_tile):
    bt_rows = batch_tile * seq_len
    x = x_ref[...]                                            # (TB*T, Cin) flat slab

    # time index of each flattened row within its batch element (causal masking)
    phase = jax.lax.broadcasted_iota(jnp.int32, (bt_rows, 1), 0) % seq_len

    def causal_conv(h, w_stacked, b, dilation):
        """Dilated causal conv1d, channels-last, batch flattened into rows.

        h: (TB*T, C)  w_stacked: (ksize*C, Cout) (row k*C+i <-> tap k, chan i)
        out[t] = sum_k h[t - (ksize-1-k)*dilation] @ W_k  (zeros for t < 0 within
        each batch element), matching Conv1d(padding=(K-1)*d, dilation=d)+Chomp1d.
        """
        taps = []
        for k in range(ksize):
            s = (ksize - 1 - k) * dilation
            if s == 0:
                taps.append(h)
            elif s >= bt_rows:
                taps.append(jnp.zeros_like(h))
            else:
                shifted = jnp.concatenate(
                    [jnp.zeros((s, h.shape[1]), h.dtype), h[:bt_rows - s, :]],
                    axis=0)
                # zero out rows whose source crosses a batch-element boundary
                taps.append(jnp.where(phase >= s, shifted, 0.0))
        hs = jnp.concatenate(taps, axis=1)                    # (TB*T, K*C)
        return jnp.dot(hs, w_stacked, preferred_element_type=jnp.float32) + b

    def causal_block(h, w1, b1, w2, b2, wres, bres, dilation):
        """[conv, chomp, LeakyReLU] x2 + residual, no final activation."""
        y = _leaky_relu(causal_conv(h, w1, b1, dilation))
        y = _leaky_relu(causal_conv(y, w2, b2, dilation))
        if wres is None:
            res = h
        else:
            res = jnp.dot(h, wres, preferred_element_type=jnp.float32) + bres
        return y + res

    x = causal_block(x, w1a_ref[...], b1a_ref[...], w2a_ref[...], b2a_ref[...],
                     wra_ref[...], bra_ref[...], dilations[0])
    x = causal_block(x, w1b_ref[...], b1b_ref[...], w2b_ref[...], b2b_ref[...],
                     None, None, dilations[1])
    x = causal_block(x, w1c_ref[...], b1c_ref[...], w2c_ref[...], b2c_ref[...],
                     None, None, dilations[2])
    x = causal_block(x, w1d_ref[...], b1d_ref[...], w2d_ref[...], b2d_ref[...],
                     wrd_ref[...], brd_ref[...], dilations[3])

    # AdaptiveMaxPool1d(1) + squeeze: per-batch-element max over time.
    pooled = jnp.max(x.reshape(batch_tile, seq_len, x.shape[1]), axis=1)  # (TB, H)

    # encoder Linear -> F.relu -> MLP (Linear/ReLU/Linear/ReLU/Linear)
    z = jnp.dot(pooled, wenc_ref[...], preferred_element_type=jnp.float32) + benc_ref[...]
    z = jnp.maximum(z, 0.0)
    z = jnp.maximum(
        jnp.dot(z, wl1_ref[...], preferred_element_type=jnp.float32) + bl1_ref[...], 0.0)
    z = jnp.maximum(
        jnp.dot(z, wl2_ref[...], preferred_element_type=jnp.float32) + bl2_ref[...], 0.0)
    o_ref[...] = jnp.dot(z, wl3_ref[...], preferred_element_type=jnp.float32) + bl3_ref[...]


# ------------------------------ pallas_call glue -----------------------------

def _resident_spec(arr):
    """Whole-array VMEM block that stays put across the (batch-tile) grid."""
    zeros = (0,) * arr.ndim
    return pl.BlockSpec(arr.shape, lambda i: zeros)


def _prepare_kernel_args(params):
    """Stack conv taps along the contraction dim; make everything channels-last."""
    flat = []
    for blk in params["blocks"]:
        K, cout, cin = blk["w1"].shape
        w1s = jnp.transpose(blk["w1"], (0, 2, 1)).reshape(K * cin, cout)
        w2s = jnp.transpose(blk["w2"], (0, 2, 1)).reshape(K * cout, cout)
        flat += [w1s, blk["b1"].reshape(1, cout), w2s, blk["b2"].reshape(1, cout)]
        if blk["wres"] is not None:
            flat += [blk["wres"].T, blk["bres"].reshape(1, cout)]
    flat += [params["wenc"], params["benc"].reshape(1, -1),
             params["w1"], params["b1"].reshape(1, -1),
             params["w2"], params["b2"].reshape(1, -1),
             params["w3"], params["b3"].reshape(1, -1)]
    return flat


def actor_forward(params, obs, *, batch_tile=32):
    """obs: (B, obs_dim, T) NCT float32 -> (B, act_dim) float32."""
    blocks = params["blocks"]
    assert len(blocks) == 4, "kernel is specialized to depth=3 (+ final block)"
    assert blocks[0]["wres"] is not None and blocks[3]["wres"] is not None
    assert blocks[1]["wres"] is None and blocks[2]["wres"] is None

    B, cin, T = obs.shape
    act_dim = params["w3"].shape[1]
    dilations = tuple(int(blk["dilation"]) for blk in blocks)
    ksize = int(blocks[0]["w1"].shape[0])

    # Batch tile: whole batch when small (one grid step), otherwise a
    # sublane-aligned tile so the grid can split across TensorCores.
    if B <= batch_tile:
        tb = B
    else:
        tb = batch_tile
        assert tb % 8 == 0, "batch_tile must be sublane-aligned when tiling the batch"
    nb = -(-B // tb)
    b_pad = nb * tb

    # channels-last, time-flattened, lane-dense activation slab
    x_flat = jnp.transpose(obs, (0, 2, 1)).reshape(B * T, cin)
    if b_pad != B:
        x_flat = jnp.concatenate(
            [x_flat, jnp.zeros(((b_pad - B) * T, cin), x_flat.dtype)], axis=0)

    weights = _prepare_kernel_args(params)
    kernel = functools.partial(_actor_fused_kernel, dilations=dilations,
                               ksize=ksize, seq_len=T, batch_tile=tb)

    in_specs = [pl.BlockSpec((tb * T, cin), lambda i: (i, 0))]
    in_specs += [_resident_spec(w) for w in weights]

    out = pl.pallas_call(
        kernel,
        grid=(nb,),
        in_specs=in_specs,
        out_specs=pl.BlockSpec((tb, act_dim), lambda i: (i, 0)),
        out_shape=jax.ShapeDtypeStruct((b_pad, act_dim), jnp.float32),
        compiler_params=pltpu.CompilerParams(
            dimension_semantics=("parallel",)),   # batch tiles are independent
    )(x_flat, *weights)
    return out[:B]


# --------------------------- parameter construction -------------------------

def _conv_params(key, cin, cout, ksize):
    kw, kb = jax.random.split(key)
    scale = 1.0 / np.sqrt(cin * ksize)
    # stored as (K, Cout, Cin); tap k == PyTorch weight[:, :, k]
    w = jax.random.uniform(kw, (ksize, cout, cin), jnp.float32, -scale, scale)
    b = jax.random.uniform(kb, (cout,), jnp.float32, -scale, scale)
    return w, b


def _linear_params(key, fan_in, fan_out):
    kw, kb = jax.random.split(key)
    scale = 1.0 / np.sqrt(fan_in)
    # stored pre-transposed as (in, out) so forward is x @ W
    w = jax.random.uniform(kw, (fan_in, fan_out), jnp.float32, -scale, scale)
    b = jax.random.uniform(kb, (fan_out,), jnp.float32, -scale, scale)
    return w, b


def init_actor_params(key, obs_dim, act_dim, hidden_dim,
                      channels=40, depth=3, ksize=3):
    keys = jax.random.split(key, 3 * (depth + 1) + 4)
    ki = iter(keys)

    block_defs = [(obs_dim if i == 0 else channels, channels, 2 ** i)
                  for i in range(depth)]
    block_defs.append((channels, hidden_dim, 2 ** depth))   # final block -> reduced_size

    blocks = []
    for cin, cout, dil in block_defs:
        w1, b1 = _conv_params(next(ki), cin, cout, ksize)
        w2, b2 = _conv_params(next(ki), cout, cout, ksize)
        kres = next(ki)
        if cin != cout:
            kw, kb = jax.random.split(kres)
            scale = 1.0 / np.sqrt(cin)
            wres = jax.random.uniform(kw, (cout, cin), jnp.float32, -scale, scale)
            bres = jax.random.uniform(kb, (cout,), jnp.float32, -scale, scale)
        else:
            wres, bres = None, None
        blocks.append(dict(w1=w1, b1=b1, w2=w2, b2=b2,
                           wres=wres, bres=bres, dilation=dil))

    wenc, benc = _linear_params(next(ki), hidden_dim, hidden_dim)
    w1, b1 = _linear_params(next(ki), hidden_dim, hidden_dim)
    w2, b2 = _linear_params(next(ki), hidden_dim, hidden_dim)
    w3, b3 = _linear_params(next(ki), hidden_dim, act_dim)
    return dict(blocks=blocks, wenc=wenc, benc=benc,
                w1=w1, b1=b1, w2=w2, b2=b2, w3=w3, b3=b3)


# ------------------------------ pure-JAX reference ---------------------------

def _ref_causal_conv(x, w, b, d):
    B, cin, T = x.shape
    K = w.shape[0]
    out = jnp.zeros((B, w.shape[1], T), jnp.float32)
    for k in range(K):
        s = (K - 1 - k) * d
        if s == 0:
            xs = x
        elif s >= T:
            xs = jnp.zeros_like(x)
        else:
            xs = jnp.concatenate(
                [jnp.zeros((B, cin, s), x.dtype), x[:, :, :T - s]], axis=2)
        out = out + jnp.einsum("oi,bit->bot", w[k], xs)
    return out + b[None, :, None]


def actor_forward_ref(params, obs):
    x = obs
    for blk in params["blocks"]:
        h = _ref_causal_conv(x, blk["w1"], blk["b1"], blk["dilation"])
        h = jnp.where(h >= 0, h, NEG_SLOPE * h)
        h = _ref_causal_conv(h, blk["w2"], blk["b2"], blk["dilation"])
        h = jnp.where(h >= 0, h, NEG_SLOPE * h)
        if blk["wres"] is not None:
            res = jnp.einsum("oi,bit->bot", blk["wres"], x) + blk["bres"][None, :, None]
        else:
            res = x
        x = h + res
    pooled = jnp.max(x, axis=2)                               # AdaptiveMaxPool1d(1)
    z = jnp.maximum(pooled @ params["wenc"] + params["benc"], 0.0)
    z = jnp.maximum(z @ params["w1"] + params["b1"], 0.0)
    z = jnp.maximum(z @ params["w2"] + params["b2"], 0.0)
    return z @ params["w3"] + params["b3"]


# ------------------------------------ main ----------------------------------

if __name__ == "__main__":
    # small shapes consistent with the module: Actor(obs_dim=4, act_dim=6,
    # hidden_dim=32); obs is a (batch=2, obs_dim=4, T=16) time series (NCT).
    B, obs_dim, T = 2, 4, 16
    act_dim, hidden_dim = 6, 32

    root = jax.random.PRNGKey(0)
    k_params, k_obs = jax.random.split(root)
    params = init_actor_params(k_params, obs_dim, act_dim, hidden_dim)
    obs = jax.random.normal(k_obs, (B, obs_dim, T), jnp.float32)

    out = jax.block_until_ready(actor_forward(params, obs))
    assert out.shape == (B, act_dim), out.shape

    ref = jax.block_until_ready(actor_forward_ref(params, obs))
    np.testing.assert_allclose(np.asarray(out), np.asarray(ref),
                               rtol=1e-4, atol=1e-4)
    print("KERNEL_OK")
</pallas_src>

<mosaic_0001>
module attributes {stable_mosaic.version = 11 : i64} {
  func.func @_actor_fused_kernel(%arg0: i32, %arg1: memref<32x4xf32, #tpu.memory_space<vmem>>, %arg2: memref<12x40xf32, #tpu.memory_space<vmem>>, %arg3: memref<1x40xf32, #tpu.memory_space<vmem>>, %arg4: memref<120x40xf32, #tpu.memory_space<vmem>>, %arg5: memref<1x40xf32, #tpu.memory_space<vmem>>, %arg6: memref<4x40xf32, #tpu.memory_space<vmem>>, %arg7: memref<1x40xf32, #tpu.memory_space<vmem>>, %arg8: memref<120x40xf32, #tpu.memory_space<vmem>>, %arg9: memref<1x40xf32, #tpu.memory_space<vmem>>, %arg10: memref<120x40xf32, #tpu.memory_space<vmem>>, %arg11: memref<1x40xf32, #tpu.memory_space<vmem>>, %arg12: memref<120x40xf32, #tpu.memory_space<vmem>>, %arg13: memref<1x40xf32, #tpu.memory_space<vmem>>, %arg14: memref<120x40xf32, #tpu.memory_space<vmem>>, %arg15: memref<1x40xf32, #tpu.memory_space<vmem>>, %arg16: memref<120x32xf32, #tpu.memory_space<vmem>>, %arg17: memref<1x32xf32, #tpu.memory_space<vmem>>, %arg18: memref<96x32xf32, #tpu.memory_space<vmem>>, %arg19: memref<1x32xf32, #tpu.memory_space<vmem>>, %arg20: memref<40x32xf32, #tpu.memory_space<vmem>>, %arg21: memref<1x32xf32, #tpu.memory_space<vmem>>, %arg22: memref<32x32xf32, #tpu.memory_space<vmem>>, %arg23: memref<1x32xf32, #tpu.memory_space<vmem>>, %arg24: memref<32x32xf32, #tpu.memory_space<vmem>>, %arg25: memref<1x32xf32, #tpu.memory_space<vmem>>, %arg26: memref<32x32xf32, #tpu.memory_space<vmem>>, %arg27: memref<1x32xf32, #tpu.memory_space<vmem>>, %arg28: memref<32x6xf32, #tpu.memory_space<vmem>>, %arg29: memref<1x6xf32, #tpu.memory_space<vmem>>, %arg30: memref<2x6xf32, #tpu.memory_space<vmem>>) attributes {dimension_semantics = [#tpu.dimension_semantics<parallel>], iteration_bounds = array<i64: 1>, scalar_prefetch = 0 : i64, scratch_operands = 0 : i64, tpu.core_type = #tpu.core_type<tc>, window_params = [{transform_indices = @transform_0, window_bounds = array<i64: 32, 4>}, {pipeline_mode = #tpu.pipeline_mode<synchronous>, transform_indices = @transform_1, window_bounds = array<i64: 12, 40>}, {pipeline_mode = #tpu.pipeline_mode<synchronous>, transform_indices = @transform_2, window_bounds = array<i64: 1, 40>}, {pipeline_mode = #tpu.pipeline_mode<synchronous>, transform_indices = @transform_3, window_bounds = array<i64: 120, 40>}, {pipeline_mode = #tpu.pipeline_mode<synchronous>, transform_indices = @transform_4, window_bounds = array<i64: 1, 40>}, {pipeline_mode = #tpu.pipeline_mode<synchronous>, transform_indices = @transform_5, window_bounds = array<i64: 4, 40>}, {pipeline_mode = #tpu.pipeline_mode<synchronous>, transform_indices = @transform_6, window_bounds = array<i64: 1, 40>}, {pipeline_mode = #tpu.pipeline_mode<synchronous>, transform_indices = @transform_7, window_bounds = array<i64: 120, 40>}, {pipeline_mode = #tpu.pipeline_mode<synchronous>, transform_indices = @transform_8, window_bounds = array<i64: 1, 40>}, {pipeline_mode = #tpu.pipeline_mode<synchronous>, transform_indices = @transform_9, window_bounds = array<i64: 120, 40>}, {pipeline_mode = #tpu.pipeline_mode<synchronous>, transform_indices = @transform_10, window_bounds = array<i64: 1, 40>}, {pipeline_mode = #tpu.pipeline_mode<synchronous>, transform_indices = @transform_11, window_bounds = array<i64: 120, 40>}, {pipeline_mode = #tpu.pipeline_mode<synchronous>, transform_indices = @transform_12, window_bounds = array<i64: 1, 40>}, {pipeline_mode = #tpu.pipeline_mode<synchronous>, transform_indices = @transform_13, window_bounds = array<i64: 120, 40>}, {pipeline_mode = #tpu.pipeline_mode<synchronous>, transform_indices = @transform_14, window_bounds = array<i64: 1, 40>}, {pipeline_mode = #tpu.pipeline_mode<synchronous>, transform_indices = @transform_15, window_bounds = array<i64: 120, 32>}, {pipeline_mode = #tpu.pipeline_mode<synchronous>, transform_indices = @transform_16, window_bounds = array<i64: 1, 32>}, {pipeline_mode = #tpu.pipeline_mode<synchronous>, transform_indices = @transform_17, window_bounds = array<i64: 96, 32>}, {pipeline_mode = #tpu.pipeline_mode<synchronous>, transform_indices = @transform_18, window_bounds = array<i64: 1, 32>}, {pipeline_mode = #tpu.pipeline_mode<synchronous>, transform_indices = @transform_19, window_bounds = array<i64: 40, 32>}, {pipeline_mode = #tpu.pipeline_mode<synchronous>, transform_indices = @transform_20, window_bounds = array<i64: 1, 32>}, {pipeline_mode = #tpu.pipeline_mode<synchronous>, transform_indices = @transform_21, window_bounds = array<i64: 32, 32>}, {pipeline_mode = #tpu.pipeline_mode<synchronous>, transform_indices = @transform_22, window_bounds = array<i64: 1, 32>}, {pipeline_mode = #tpu.pipeline_mode<synchronous>, transform_indices = @transform_23, window_bounds = array<i64: 32, 32>}, {pipeline_mode = #tpu.pipeline_mode<synchronous>, transform_indices = @transform_24, window_bounds = array<i64: 1, 32>}, {pipeline_mode = #tpu.pipeline_mode<synchronous>, transform_indices = @transform_25, window_bounds = array<i64: 32, 32>}, {pipeline_mode = #tpu.pipeline_mode<synchronous>, transform_indices = @transform_26, window_bounds = array<i64: 1, 32>}, {pipeline_mode = #tpu.pipeline_mode<synchronous>, transform_indices = @transform_27, window_bounds = array<i64: 32, 6>}, {pipeline_mode = #tpu.pipeline_mode<synchronous>, transform_indices = @transform_28, window_bounds = array<i64: 1, 6>}, {transform_indices = @transform_29, window_bounds = array<i64: 2, 6>}]} {
    %c0 = arith.constant 0 : index
    %c0_0 = arith.constant 0 : index
    %0 = vector.load %arg1[%c0, %c0_0] : memref<32x4xf32, #tpu.memory_space<vmem>>, vector<32x4xf32>
    %1 = tpu.iota {dimensions = array<i32: 0>} : vector<32x1xi32>
    %c16_i32 = arith.constant 16 : i32
    %c0_i32 = arith.constant 0 : i32
    %2 = arith.cmpi eq, %c16_i32, %c0_i32 : i32
    %c1_i32 = arith.constant 1 : i32
    %3 = arith.select %2, %c1_i32, %c16_i32 : i32
    %4 = vector.broadcast %3 : i32 to vector<32x1xi32>
    %5 = arith.remsi %1, %4 : vector<32x1xi32>
    %c0_i32_1 = arith.constant 0 : i32
    %6 = vector.broadcast %c0_i32_1 : i32 to vector<32x1xi32>
    %7 = arith.cmpi ne, %5, %6 : vector<32x1xi32>
    %c0_i32_2 = arith.constant 0 : i32
    %8 = vector.broadcast %c0_i32_2 : i32 to vector<32x1xi32>
    %9 = arith.cmpi slt, %5, %8 : vector<32x1xi32>
    %c0_i32_3 = arith.constant 0 : i32
    %10 = arith.cmpi slt, %3, %c0_i32_3 : i32
    %11 = vector.broadcast %10 : i1 to vector<32x1xi1>
    %12 = vector.broadcast %11 : vector<32x1xi1> to vector<32x1xi1>
    %13 = arith.xori %9, %12 : vector<32x1xi1>
    %14 = arith.andi %13, %7 : vector<32x1xi1>
    %15 = vector.broadcast %3 : i32 to vector<32x1xi32>
    %16 = arith.addi %5, %15 : vector<32x1xi32>
    %17 = arith.select %14, %16, %5 : vector<32x1xi1>, vector<32x1xi32>
    %c0_4 = arith.constant 0 : index
    %c0_5 = arith.constant 0 : index
    %18 = vector.load %arg2[%c0_4, %c0_5] : memref<12x40xf32, #tpu.memory_space<vmem>>, vector<12x40xf32>
    %c0_6 = arith.constant 0 : index
    %c0_7 = arith.constant 0 : index
    %19 = vector.load %arg3[%c0_6, %c0_7] : memref<1x40xf32, #tpu.memory_space<vmem>>, vector<1x40xf32>
    %c0_8 = arith.constant 0 : index
    %c0_9 = arith.constant 0 : index
    %20 = vector.load %arg4[%c0_8, %c0_9] : memref<120x40xf32, #tpu.memory_space<vmem>>, vector<120x40xf32>
    %c0_10 = arith.constant 0 : index
    %c0_11 = arith.constant 0 : index
    %21 = vector.load %arg5[%c0_10, %c0_11] : memref<1x40xf32, #tpu.memory_space<vmem>>, vector<1x40xf32>
    %c0_12 = arith.constant 0 : index
    %c0_13 = arith.constant 0 : index
    %22 = vector.load %arg6[%c0_12, %c0_13] : memref<4x40xf32, #tpu.memory_space<vmem>>, vector<4x40xf32>
    %c0_14 = arith.constant 0 : index
    %c0_15 = arith.constant 0 : index
    %23 = vector.load %arg7[%c0_14, %c0_15] : memref<1x40xf32, #tpu.memory_space<vmem>>, vector<1x40xf32>
    %cst = arith.constant 0.000000e+00 : f32
    %24 = vector.broadcast %cst : f32 to vector<2x4xf32>
    %25 = vector.extract_strided_slice %0 {offsets = [0, 0], sizes = [30, 4], strides = [1, 1]} : vector<32x4xf32> to vector<30x4xf32>
    %26 = tpu.concatenate %24, %25 in 0 : vector<2x4xf32>, vector<30x4xf32> -> vector<32x4xf32>
    %c2_i32 = arith.constant 2 : i32
    %27 = vector.broadcast %c2_i32 : i32 to vector<32x1xi32>
    %28 = arith.cmpi sge, %17, %27 : vector<32x1xi32>
    %cst_16 = arith.constant 0.000000e+00 : f32
    %29 = vector.shape_cast %28 : vector<32x1xi1> to vector<32x1xi1>
    %30 = vector.broadcast %29 : vector<32x1xi1> to vector<32x4xi1>
    %31 = vector.broadcast %cst_16 : f32 to vector<32x4xf32>
    %32 = arith.select %30, %26, %31 : vector<32x4xi1>, vector<32x4xf32>
    %cst_17 = arith.constant 0.000000e+00 : f32
    %33 = vector.broadcast %cst_17 : f32 to vector<1x4xf32>
    %34 = vector.extract_strided_slice %0 {offsets = [0, 0], sizes = [31, 4], strides = [1, 1]} : vector<32x4xf32> to vector<31x4xf32>
    %35 = tpu.concatenate %33, %34 in 0 : vector<1x4xf32>, vector<31x4xf32> -> vector<32x4xf32>
    %c1_i32_18 = arith.constant 1 : i32
    %36 = vector.broadcast %c1_i32_18 : i32 to vector<32x1xi32>
    %37 = arith.cmpi sge, %17, %36 : vector<32x1xi32>
    %cst_19 = arith.constant 0.000000e+00 : f32
    %38 = vector.shape_cast %37 : vector<32x1xi1> to vector<32x1xi1>
    %39 = vector.broadcast %38 : vector<32x1xi1> to vector<32x4xi1>
    %40 = vector.broadcast %cst_19 : f32 to vector<32x4xf32>
    %41 = arith.select %39, %35, %40 : vector<32x4xi1>, vector<32x4xf32>
    %42 = tpu.concatenate %32, %41, %0 in 1 : vector<32x4xf32>, vector<32x4xf32>, vector<32x4xf32> -> vector<32x12xf32>
    %cst_20 = arith.constant dense<0.000000e+00> : vector<32x40xf32>
    %43 = tpu.matmul %42, %18, %cst_20 {dimension_numbers = #tpu.dot_dimension_numbers<[1], [0], [0], [1], [0, 0, 1, 1], [], []>} : vector<32x12xf32>, vector<12x40xf32>, vector<32x40xf32> -> vector<32x40xf32>
    %44 = vector.broadcast %19 : vector<1x40xf32> to vector<32x40xf32>
    %45 = arith.addf %43, %44 : vector<32x40xf32>
    %cst_21 = arith.constant 0.000000e+00 : f32
    %46 = vector.broadcast %cst_21 : f32 to vector<32x40xf32>
    %47 = arith.cmpf oge, %45, %46 : vector<32x40xf32>
    %cst_22 = arith.constant 0.00999999977 : f32
    %48 = vector.broadcast %cst_22 : f32 to vector<32x40xf32>
    %49 = arith.mulf %48, %45 : vector<32x40xf32>
    %50 = arith.select %47, %45, %49 : vector<32x40xi1>, vector<32x40xf32>
    %cst_23 = arith.constant 0.000000e+00 : f32
    %51 = vector.broadcast %cst_23 : f32 to vector<2x40xf32>
    %52 = vector.extract_strided_slice %50 {offsets = [0, 0], sizes = [30, 40], strides = [1, 1]} : vector<32x40xf32> to vector<30x40xf32>
    %53 = tpu.concatenate %51, %52 in 0 : vector<2x40xf32>, vector<30x40xf32> -> vector<32x40xf32>
    %c2_i32_24 = arith.constant 2 : i32
    %54 = vector.broadcast %c2_i32_24 : i32 to vector<32x1xi32>
    %55 = arith.cmpi sge, %17, %54 : vector<32x1xi32>
    %cst_25 = arith.constant 0.000000e+00 : f32
    %56 = vector.shape_cast %55 : vector<32x1xi1> to vector<32x1xi1>
    %57 = vector.broadcast %56 : vector<32x1xi1> to vector<32x40xi1>
    %58 = vector.broadcast %cst_25 : f32 to vector<32x40xf32>
    %59 = arith.select %57, %53, %58 : vector<32x40xi1>, vector<32x40xf32>
    %cst_26 = arith.constant 0.000000e+00 : f32
    %60 = vector.broadcast %cst_26 : f32 to vector<1x40xf32>
    %61 = vector.extract_strided_slice %50 {offsets = [0, 0], sizes = [31, 40], strides = [1, 1]} : vector<32x40xf32> to vector<31x40xf32>
    %62 = tpu.concatenate %60, %61 in 0 : vector<1x40xf32>, vector<31x40xf32> -> vector<32x40xf32>
    %c1_i32_27 = arith.constant 1 : i32
    %63 = vector.broadcast %c1_i32_27 : i32 to vector<32x1xi32>
    %64 = arith.cmpi sge, %17, %63 : vector<32x1xi32>
    %cst_28 = arith.constant 0.000000e+00 : f32
    %65 = vector.shape_cast %64 : vector<32x1xi1> to vector<32x1xi1>
    %66 = vector.broadcast %65 : vector<32x1xi1> to vector<32x40xi1>
    %67 = vector.broadcast %cst_28 : f32 to vector<32x40xf32>
    %68 = arith.select %66, %62, %67 : vector<32x40xi1>, vector<32x40xf32>
    %69 = tpu.concatenate %59, %68, %50 in 1 : vector<32x40xf32>, vector<32x40xf32>, vector<32x40xf32> -> vector<32x120xf32>
    %cst_29 = arith.constant dense<0.000000e+00> : vector<32x40xf32>
    %70 = tpu.matmul %69, %20, %cst_29 {dimension_numbers = #tpu.dot_dimension_numbers<[1], [0], [0], [1], [0, 0, 1, 1], [], []>} : vector<32x120xf32>, vector<120x40xf32>, vector<32x40xf32> -> vector<32x40xf32>
    %71 = vector.broadcast %21 : vector<1x40xf32> to vector<32x40xf32>
    %72 = arith.addf %70, %71 : vector<32x40xf32>
    %cst_30 = arith.constant 0.000000e+00 : f32
    %73 = vector.broadcast %cst_30 : f32 to vector<32x40xf32>
    %74 = arith.cmpf oge, %72, %73 : vector<32x40xf32>
    %cst_31 = arith.constant 0.00999999977 : f32
    %75 = vector.broadcast %cst_31 : f32 to vector<32x40xf32>
    %76 = arith.mulf %75, %72 : vector<32x40xf32>
    %77 = arith.select %74, %72, %76 : vector<32x40xi1>, vector<32x40xf32>
    %cst_32 = arith.constant dense<0.000000e+00> : vector<32x40xf32>
    %78 = tpu.matmul %0, %22, %cst_32 {dimension_numbers = #tpu.dot_dimension_numbers<[1], [0], [0], [1], [0, 0, 1, 1], [], []>} : vector<32x4xf32>, vector<4x40xf32>, vector<32x40xf32> -> vector<32x40xf32>
    %79 = vector.broadcast %23 : vector<1x40xf32> to vector<32x40xf32>
    %80 = arith.addf %78, %79 : vector<32x40xf32>
    %81 = arith.addf %77, %80 : vector<32x40xf32>
    %c0_33 = arith.constant 0 : index
    %c0_34 = arith.constant 0 : index
    %82 = vector.load %arg8[%c0_33, %c0_34] : memref<120x40xf32, #tpu.memory_space<vmem>>, vector<120x40xf32>
    %c0_35 = arith.constant 0 : index
    %c0_36 = arith.constant 0 : index
    %83 = vector.load %arg9[%c0_35, %c0_36] : memref<1x40xf32, #tpu.memory_space<vmem>>, vector<1x40xf32>
    %c0_37 = arith.constant 0 : index
    %c0_38 = arith.constant 0 : index
    %84 = vector.load %arg10[%c0_37, %c0_38] : memref<120x40xf32, #tpu.memory_space<vmem>>, vector<120x40xf32>
    %c0_39 = arith.constant 0 : index
    %c0_40 = arith.constant 0 : index
    %85 = vector.load %arg11[%c0_39, %c0_40] : memref<1x40xf32, #tpu.memory_space<vmem>>, vector<1x40xf32>
    %cst_41 = arith.constant 0.000000e+00 : f32
    %86 = vector.broadcast %cst_41 : f32 to vector<4x40xf32>
    %87 = vector.extract_strided_slice %81 {offsets = [0, 0], sizes = [28, 40], strides = [1, 1]} : vector<32x40xf32> to vector<28x40xf32>
    %88 = tpu.concatenate %86, %87 in 0 : vector<4x40xf32>, vector<28x40xf32> -> vector<32x40xf32>
    %c4_i32 = arith.constant 4 : i32
    %89 = vector.broadcast %c4_i32 : i32 to vector<32x1xi32>
    %90 = arith.cmpi sge, %17, %89 : vector<32x1xi32>
    %cst_42 = arith.constant 0.000000e+00 : f32
    %91 = vector.shape_cast %90 : vector<32x1xi1> to vector<32x1xi1>
    %92 = vector.broadcast %91 : vector<32x1xi1> to vector<32x40xi1>
    %93 = vector.broadcast %cst_42 : f32 to vector<32x40xf32>
    %94 = arith.select %92, %88, %93 : vector<32x40xi1>, vector<32x40xf32>
    %cst_43 = arith.constant 0.000000e+00 : f32
    %95 = vector.broadcast %cst_43 : f32 to vector<2x40xf32>
    %96 = vector.extract_strided_slice %81 {offsets = [0, 0], sizes = [30, 40], strides = [1, 1]} : vector<32x40xf32> to vector<30x40xf32>
    %97 = tpu.concatenate %95, %96 in 0 : vector<2x40xf32>, vector<30x40xf32> -> vector<32x40xf32>
    %c2_i32_44 = arith.constant 2 : i32
    %98 = vector.broadcast %c2_i32_44 : i32 to vector<32x1xi32>
    %99 = arith.cmpi sge, %17, %98 : vector<32x1xi32>
    %cst_45 = arith.constant 0.000000e+00 : f32
    %100 = vector.shape_cast %99 : vector<32x1xi1> to vector<32x1xi1>
    %101 = vector.broadcast %100 : vector<32x1xi1> to vector<32x40xi1>
    %102 = vector.broadcast %cst_45 : f32 to vector<32x40xf32>
    %103 = arith.select %101, %97, %102 : vector<32x40xi1>, vector<32x40xf32>
    %104 = tpu.concatenate %94, %103, %81 in 1 : vector<32x40xf32>, vector<32x40xf32>, vector<32x40xf32> -> vector<32x120xf32>
    %cst_46 = arith.constant dense<0.000000e+00> : vector<32x40xf32>
    %105 = tpu.matmul %104, %82, %cst_46 {dimension_numbers = #tpu.dot_dimension_numbers<[1], [0], [0], [1], [0, 0, 1, 1], [], []>} : vector<32x120xf32>, vector<120x40xf32>, vector<32x40xf32> -> vector<32x40xf32>
    %106 = vector.broadcast %83 : vector<1x40xf32> to vector<32x40xf32>
    %107 = arith.addf %105, %106 : vector<32x40xf32>
    %cst_47 = arith.constant 0.000000e+00 : f32
    %108 = vector.broadcast %cst_47 : f32 to vector<32x40xf32>
    %109 = arith.cmpf oge, %107, %108 : vector<32x40xf32>
    %cst_48 = arith.constant 0.00999999977 : f32
    %110 = vector.broadcast %cst_48 : f32 to vector<32x40xf32>
    %111 = arith.mulf %110, %107 : vector<32x40xf32>
    %112 = arith.select %109, %107, %111 : vector<32x40xi1>, vector<32x40xf32>
    %cst_49 = arith.constant 0.000000e+00 : f32
    %113 = vector.broadcast %cst_49 : f32 to vector<4x40xf32>
    %114 = vector.extract_strided_slice %112 {offsets = [0, 0], sizes = [28, 40], strides = [1, 1]} : vector<32x40xf32> to vector<28x40xf32>
    %115 = tpu.concatenate %113, %114 in 0 : vector<4x40xf32>, vector<28x40xf32> -> vector<32x40xf32>
    %c4_i32_50 = arith.constant 4 : i32
    %116 = vector.broadcast %c4_i32_50 : i32 to vector<32x1xi32>
    %117 = arith.cmpi sge, %17, %116 : vector<32x1xi32>
    %cst_51 = arith.constant 0.000000e+00 : f32
    %118 = vector.shape_cast %117 : vector<32x1xi1> to vector<32x1xi1>
    %119 = vector.broadcast %118 : vector<32x1xi1> to vector<32x40xi1>
    %120 = vector.broadcast %cst_51 : f32 to vector<32x40xf32>
    %121 = arith.select %119, %115, %120 : vector<32x40xi1>, vector<32x40xf32>
    %cst_52 = arith.constant 0.000000e+00 : f32
    %122 = vector.broadcast %cst_52 : f32 to vector<2x40xf32>
    %123 = vector.extract_strided_slice %112 {offsets = [0, 0], sizes = [30, 40], strides = [1, 1]} : vector<32x40xf32> to vector<30x40xf32>
    %124 = tpu.concatenate %122, %123 in 0 : vector<2x40xf32>, vector<30x40xf32> -> vector<32x40xf32>
    %c2_i32_53 = arith.constant 2 : i32
    %125 = vector.broadcast %c2_i32_53 : i32 to vector<32x1xi32>
    %126 = arith.cmpi sge, %17, %125 : vector<32x1xi32>
    %cst_54 = arith.constant 0.000000e+00 : f32
    %127 = vector.shape_cast %126 : vector<32x1xi1> to vector<32x1xi1>
    %128 = vector.broadcast %127 : vector<32x1xi1> to vector<32x40xi1>
    %129 = vector.broadcast %cst_54 : f32 to vector<32x40xf32>
    %130 = arith.select %128, %124, %129 : vector<32x40xi1>, vector<32x40xf32>
    %131 = tpu.concatenate %121, %130, %112 in 1 : vector<32x40xf32>, vector<32x40xf32>, vector<32x40xf32> -> vector<32x120xf32>
    %cst_55 = arith.constant dense<0.000000e+00> : vector<32x40xf32>
    %132 = tpu.matmul %131, %84, %cst_55 {dimension_numbers = #tpu.dot_dimension_numbers<[1], [0], [0], [1], [0, 0, 1, 1], [], []>} : vector<32x120xf32>, vector<120x40xf32>, vector<32x40xf32> -> vector<32x40xf32>
    %133 = vector.broadcast %85 : vector<1x40xf32> to vector<32x40xf32>
    %134 = arith.addf %132, %133 : vector<32x40xf32>
    %cst_56 = arith.constant 0.000000e+00 : f32
    %135 = vector.broadcast %cst_56 : f32 to vector<32x40xf32>
    %136 = arith.cmpf oge, %134, %135 : vector<32x40xf32>
    %cst_57 = arith.constant 0.00999999977 : f32
    %137 = vector.broadcast %cst_57 : f32 to vector<32x40xf32>
    %138 = arith.mulf %137, %134 : vector<32x40xf32>
    %139 = arith.select %136, %134, %138 : vector<32x40xi1>, vector<32x40xf32>
    %140 = arith.addf %139, %81 : vector<32x40xf32>
    %c0_58 = arith.constant 0 : index
    %c0_59 = arith.constant 0 : index
    %141 = vector.load %arg12[%c0_58, %c0_59] : memref<120x40xf32, #tpu.memory_space<vmem>>, vector<120x40xf32>
    %c0_60 = arith.constant 0 : index
    %c0_61 = arith.constant 0 : index
    %142 = vector.load %arg13[%c0_60, %c0_61] : memref<1x40xf32, #tpu.memory_space<vmem>>, vector<1x40xf32>
    %c0_62 = arith.constant 0 : index
    %c0_63 = arith.constant 0 : index
    %143 = vector.load %arg14[%c0_62, %c0_63] : memref<120x40xf32, #tpu.memory_space<vmem>>, vector<120x40xf32>
    %c0_64 = arith.constant 0 : index
    %c0_65 = arith.constant 0 : index
    %144 = vector.load %arg15[%c0_64, %c0_65] : memref<1x40xf32, #tpu.memory_space<vmem>>, vector<1x40xf32>
    %cst_66 = arith.constant 0.000000e+00 : f32
    %145 = vector.broadcast %cst_66 : f32 to vector<8x40xf32>
    %146 = vector.extract_strided_slice %140 {offsets = [0, 0], sizes = [24, 40], strides = [1, 1]} : vector<32x40xf32> to vector<24x40xf32>
    %147 = tpu.concatenate %145, %146 in 0 : vector<8x40xf32>, vector<24x40xf32> -> vector<32x40xf32>
    %c8_i32 = arith.constant 8 : i32
    %148 = vector.broadcast %c8_i32 : i32 to vector<32x1xi32>
    %149 = arith.cmpi sge, %17, %148 : vector<32x1xi32>
    %cst_67 = arith.constant 0.000000e+00 : f32
    %150 = vector.shape_cast %149 : vector<32x1xi1> to vector<32x1xi1>
    %151 = vector.broadcast %150 : vector<32x1xi1> to vector<32x40xi1>
    %152 = vector.broadcast %cst_67 : f32 to vector<32x40xf32>
    %153 = arith.select %151, %147, %152 : vector<32x40xi1>, vector<32x40xf32>
    %cst_68 = arith.constant 0.000000e+00 : f32
    %154 = vector.broadcast %cst_68 : f32 to vector<4x40xf32>
    %155 = vector.extract_strided_slice %140 {offsets = [0, 0], sizes = [28, 40], strides = [1, 1]} : vector<32x40xf32> to vector<28x40xf32>
    %156 = tpu.concatenate %154, %155 in 0 : vector<4x40xf32>, vector<28x40xf32> -> vector<32x40xf32>
    %c4_i32_69 = arith.constant 4 : i32
    %157 = vector.broadcast %c4_i32_69 : i32 to vector<32x1xi32>
    %158 = arith.cmpi sge, %17, %157 : vector<32x1xi32>
    %cst_70 = arith.constant 0.000000e+00 : f32
    %159 = vector.shape_cast %158 : vector<32x1xi1> to vector<32x1xi1>
    %160 = vector.broadcast %159 : vector<32x1xi1> to vector<32x40xi1>
    %161 = vector.broadcast %cst_70 : f32 to vector<32x40xf32>
    %162 = arith.select %160, %156, %161 : vector<32x40xi1>, vector<32x40xf32>
    %163 = tpu.concatenate %153, %162, %140 in 1 : vector<32x40xf32>, vector<32x40xf32>, vector<32x40xf32> -> vector<32x120xf32>
    %cst_71 = arith.constant dense<0.000000e+00> : vector<32x40xf32>
    %164 = tpu.matmul %163, %141, %cst_71 {dimension_numbers = #tpu.dot_dimension_numbers<[1], [0], [0], [1], [0, 0, 1, 1], [], []>} : vector<32x120xf32>, vector<120x40xf32>, vector<32x40xf32> -> vector<32x40xf32>
    %165 = vector.broadcast %142 : vector<1x40xf32> to vector<32x40xf32>
    %166 = arith.addf %164, %165 : vector<32x40xf32>
    %cst_72 = arith.constant 0.000000e+00 : f32
    %167 = vector.broadcast %cst_72 : f32 to vector<32x40xf32>
    %168 = arith.cmpf oge, %166, %167 : vector<32x40xf32>
    %cst_73 = arith.constant 0.00999999977 : f32
    %169 = vector.broadcast %cst_73 : f32 to vector<32x40xf32>
    %170 = arith.mulf %169, %166 : vector<32x40xf32>
    %171 = arith.select %168, %166, %170 : vector<32x40xi1>, vector<32x40xf32>
    %cst_74 = arith.constant 0.000000e+00 : f32
    %172 = vector.broadcast %cst_74 : f32 to vector<8x40xf32>
    %173 = vector.extract_strided_slice %171 {offsets = [0, 0], sizes = [24, 40], strides = [1, 1]} : vector<32x40xf32> to vector<24x40xf32>
    %174 = tpu.concatenate %172, %173 in 0 : vector<8x40xf32>, vector<24x40xf32> -> vector<32x40xf32>
    %c8_i32_75 = arith.constant 8 : i32
    %175 = vector.broadcast %c8_i32_75 : i32 to vector<32x1xi32>
    %176 = arith.cmpi sge, %17, %175 : vector<32x1xi32>
    %cst_76 = arith.constant 0.000000e+00 : f32
    %177 = vector.shape_cast %176 : vector<32x1xi1> to vector<32x1xi1>
    %178 = vector.broadcast %177 : vector<32x1xi1> to vector<32x40xi1>
    %179 = vector.broadcast %cst_76 : f32 to vector<32x40xf32>
    %180 = arith.select %178, %174, %179 : vector<32x40xi1>, vector<32x40xf32>
    %cst_77 = arith.constant 0.000000e+00 : f32
    %181 = vector.broadcast %cst_77 : f32 to vector<4x40xf32>
    %182 = vector.extract_strided_slice %171 {offsets = [0, 0], sizes = [28, 40], strides = [1, 1]} : vector<32x40xf32> to vector<28x40xf32>
    %183 = tpu.concatenate %181, %182 in 0 : vector<4x40xf32>, vector<28x40xf32> -> vector<32x40xf32>
    %c4_i32_78 = arith.constant 4 : i32
    %184 = vector.broadcast %c4_i32_78 : i32 to vector<32x1xi32>
    %185 = arith.cmpi sge, %17, %184 : vector<32x1xi32>
    %cst_79 = arith.constant 0.000000e+00 : f32
    %186 = vector.shape_cast %185 : vector<32x1xi1> to vector<32x1xi1>
    %187 = vector.broadcast %186 : vector<32x1xi1> to vector<32x40xi1>
    %188 = vector.broadcast %cst_79 : f32 to vector<32x40xf32>
    %189 = arith.select %187, %183, %188 : vector<32x40xi1>, vector<32x40xf32>
    %190 = tpu.concatenate %180, %189, %171 in 1 : vector<32x40xf32>, vector<32x40xf32>, vector<32x40xf32> -> vector<32x120xf32>
    %cst_80 = arith.constant dense<0.000000e+00> : vector<32x40xf32>
    %191 = tpu.matmul %190, %143, %cst_80 {dimension_numbers = #tpu.dot_dimension_numbers<[1], [0], [0], [1], [0, 0, 1, 1], [], []>} : vector<32x120xf32>, vector<120x40xf32>, vector<32x40xf32> -> vector<32x40xf32>
    %192 = vector.broadcast %144 : vector<1x40xf32> to vector<32x40xf32>
    %193 = arith.addf %191, %192 : vector<32x40xf32>
    %cst_81 = arith.constant 0.000000e+00 : f32
    %194 = vector.broadcast %cst_81 : f32 to vector<32x40xf32>
    %195 = arith.cmpf oge, %193, %194 : vector<32x40xf32>
    %cst_82 = arith.constant 0.00999999977 : f32
    %196 = vector.broadcast %cst_82 : f32 to vector<32x40xf32>
    %197 = arith.mulf %196, %193 : vector<32x40xf32>
    %198 = arith.select %195, %193, %197 : vector<32x40xi1>, vector<32x40xf32>
    %199 = arith.addf %198, %140 : vector<32x40xf32>
    %c0_83 = arith.constant 0 : index
    %c0_84 = arith.constant 0 : index
    %200 = vector.load %arg16[%c0_83, %c0_84] : memref<120x32xf32, #tpu.memory_space<vmem>>, vector<120x32xf32>
    %c0_85 = arith.constant 0 : index
    %c0_86 = arith.constant 0 : index
    %201 = vector.load %arg17[%c0_85, %c0_86] : memref<1x32xf32, #tpu.memory_space<vmem>>, vector<1x32xf32>
    %c0_87 = arith.constant 0 : index
    %c0_88 = arith.constant 0 : index
    %202 = vector.load %arg18[%c0_87, %c0_88] : memref<96x32xf32, #tpu.memory_space<vmem>>, vector<96x32xf32>
    %c0_89 = arith.constant 0 : index
    %c0_90 = arith.constant 0 : index
    %203 = vector.load %arg19[%c0_89, %c0_90] : memref<1x32xf32, #tpu.memory_space<vmem>>, vector<1x32xf32>
    %c0_91 = arith.constant 0 : index
    %c0_92 = arith.constant 0 : index
    %204 = vector.load %arg20[%c0_91, %c0_92] : memref<40x32xf32, #tpu.memory_space<vmem>>, vector<40x32xf32>
    %c0_93 = arith.constant 0 : index
    %c0_94 = arith.constant 0 : index
    %205 = vector.load %arg21[%c0_93, %c0_94] : memref<1x32xf32, #tpu.memory_space<vmem>>, vector<1x32xf32>
    %cst_95 = arith.constant 0.000000e+00 : f32
    %206 = vector.broadcast %cst_95 : f32 to vector<16x40xf32>
    %207 = vector.extract_strided_slice %199 {offsets = [0, 0], sizes = [16, 40], strides = [1, 1]} : vector<32x40xf32> to vector<16x40xf32>
    %208 = tpu.concatenate %206, %207 in 0 : vector<16x40xf32>, vector<16x40xf32> -> vector<32x40xf32>
    %c16_i32_96 = arith.constant 16 : i32
    %209 = vector.broadcast %c16_i32_96 : i32 to vector<32x1xi32>
    %210 = arith.cmpi sge, %17, %209 : vector<32x1xi32>
    %cst_97 = arith.constant 0.000000e+00 : f32
    %211 = vector.shape_cast %210 : vector<32x1xi1> to vector<32x1xi1>
    %212 = vector.broadcast %211 : vector<32x1xi1> to vector<32x40xi1>
    %213 = vector.broadcast %cst_97 : f32 to vector<32x40xf32>
    %214 = arith.select %212, %208, %213 : vector<32x40xi1>, vector<32x40xf32>
    %cst_98 = arith.constant 0.000000e+00 : f32
    %215 = vector.broadcast %cst_98 : f32 to vector<8x40xf32>
    %216 = vector.extract_strided_slice %199 {offsets = [0, 0], sizes = [24, 40], strides = [1, 1]} : vector<32x40xf32> to vector<24x40xf32>
    %217 = tpu.concatenate %215, %216 in 0 : vector<8x40xf32>, vector<24x40xf32> -> vector<32x40xf32>
    %c8_i32_99 = arith.constant 8 : i32
    %218 = vector.broadcast %c8_i32_99 : i32 to vector<32x1xi32>
    %219 = arith.cmpi sge, %17, %218 : vector<32x1xi32>
    %cst_100 = arith.constant 0.000000e+00 : f32
    %220 = vector.shape_cast %219 : vector<32x1xi1> to vector<32x1xi1>
    %221 = vector.broadcast %220 : vector<32x1xi1> to vector<32x40xi1>
    %222 = vector.broadcast %cst_100 : f32 to vector<32x40xf32>
    %223 = arith.select %221, %217, %222 : vector<32x40xi1>, vector<32x40xf32>
    %224 = tpu.concatenate %214, %223, %199 in 1 : vector<32x40xf32>, vector<32x40xf32>, vector<32x40xf32> -> vector<32x120xf32>
    %cst_101 = arith.constant dense<0.000000e+00> : vector<32x32xf32>
    %225 = tpu.matmul %224, %200, %cst_101 {dimension_numbers = #tpu.dot_dimension_numbers<[1], [0], [0], [1], [0, 0, 1, 1], [], []>} : vector<32x120xf32>, vector<120x32xf32>, vector<32x32xf32> -> vector<32x32xf32>
    %226 = vector.broadcast %201 : vector<1x32xf32> to vector<32x32xf32>
    %227 = arith.addf %225, %226 : vector<32x32xf32>
    %cst_102 = arith.constant 0.000000e+00 : f32
    %228 = vector.broadcast %cst_102 : f32 to vector<32x32xf32>
    %229 = arith.cmpf oge, %227, %228 : vector<32x32xf32>
    %cst_103 = arith.constant 0.00999999977 : f32
    %230 = vector.broadcast %cst_103 : f32 to vector<32x32xf32>
    %231 = arith.mulf %230, %227 : vector<32x32xf32>
    %232 = arith.select %229, %227, %231 : vector<32x32xi1>, vector<32x32xf32>
    %cst_104 = arith.constant 0.000000e+00 : f32
    %233 = vector.broadcast %cst_104 : f32 to vector<16x32xf32>
    %234 = vector.extract_strided_slice %232 {offsets = [0, 0], sizes = [16, 32], strides = [1, 1]} : vector<32x32xf32> to vector<16x32xf32>
    %235 = tpu.concatenate %233, %234 in 0 : vector<16x32xf32>, vector<16x32xf32> -> vector<32x32xf32>
    %c16_i32_105 = arith.constant 16 : i32
    %236 = vector.broadcast %c16_i32_105 : i32 to vector<32x1xi32>
    %237 = arith.cmpi sge, %17, %236 : vector<32x1xi32>
    %cst_106 = arith.constant 0.000000e+00 : f32
    %238 = vector.shape_cast %237 : vector<32x1xi1> to vector<32x1xi1>
    %239 = vector.broadcast %238 : vector<32x1xi1> to vector<32x32xi1>
    %240 = vector.broadcast %cst_106 : f32 to vector<32x32xf32>
    %241 = arith.select %239, %235, %240 : vector<32x32xi1>, vector<32x32xf32>
    %cst_107 = arith.constant 0.000000e+00 : f32
    %242 = vector.broadcast %cst_107 : f32 to vector<8x32xf32>
    %243 = vector.extract_strided_slice %232 {offsets = [0, 0], sizes = [24, 32], strides = [1, 1]} : vector<32x32xf32> to vector<24x32xf32>
    %244 = tpu.concatenate %242, %243 in 0 : vector<8x32xf32>, vector<24x32xf32> -> vector<32x32xf32>
    %c8_i32_108 = arith.constant 8 : i32
    %245 = vector.broadcast %c8_i32_108 : i32 to vector<32x1xi32>
    %246 = arith.cmpi sge, %17, %245 : vector<32x1xi32>
    %cst_109 = arith.constant 0.000000e+00 : f32
    %247 = vector.shape_cast %246 : vector<32x1xi1> to vector<32x1xi1>
    %248 = vector.broadcast %247 : vector<32x1xi1> to vector<32x32xi1>
    %249 = vector.broadcast %cst_109 : f32 to vector<32x32xf32>
    %250 = arith.select %248, %244, %249 : vector<32x32xi1>, vector<32x32xf32>
    %251 = tpu.concatenate %241, %250, %232 in 1 : vector<32x32xf32>, vector<32x32xf32>, vector<32x32xf32> -> vector<32x96xf32>
    %cst_110 = arith.constant dense<0.000000e+00> : vector<32x32xf32>
    %252 = tpu.matmul %251, %202, %cst_110 {dimension_numbers = #tpu.dot_dimension_numbers<[1], [0], [0], [1], [0, 0, 1, 1], [], []>} : vector<32x96xf32>, vector<96x32xf32>, vector<32x32xf32> -> vector<32x32xf32>
    %253 = vector.broadcast %203 : vector<1x32xf32> to vector<32x32xf32>
    %254 = arith.addf %252, %253 : vector<32x32xf32>
    %cst_111 = arith.constant 0.000000e+00 : f32
    %255 = vector.broadcast %cst_111 : f32 to vector<32x32xf32>
    %256 = arith.cmpf oge, %254, %255 : vector<32x32xf32>
    %cst_112 = arith.constant 0.00999999977 : f32
    %257 = vector.broadcast %cst_112 : f32 to vector<32x32xf32>
    %258 = arith.mulf %257, %254 : vector<32x32xf32>
    %259 = arith.select %256, %254, %258 : vector<32x32xi1>, vector<32x32xf32>
    %cst_113 = arith.constant dense<0.000000e+00> : vector<32x32xf32>
    %260 = tpu.matmul %199, %204, %cst_113 {dimension_numbers = #tpu.dot_dimension_numbers<[1], [0], [0], [1], [0, 0, 1, 1], [], []>} : vector<32x40xf32>, vector<40x32xf32>, vector<32x32xf32> -> vector<32x32xf32>
    %261 = vector.broadcast %205 : vector<1x32xf32> to vector<32x32xf32>
    %262 = arith.addf %260, %261 : vector<32x32xf32>
    %263 = arith.addf %259, %262 : vector<32x32xf32>
    %264 = vector.shape_cast %263 : vector<32x32xf32> to vector<2x16x32xf32>
    %cst_114 = arith.constant dense<0xFF800000> : vector<2x32xf32>
    %265 = vector.multi_reduction <maximumf>, %264, %cst_114 [1] : vector<2x16x32xf32> to vector<2x32xf32>
    %c0_115 = arith.constant 0 : index
    %c0_116 = arith.constant 0 : index
    %266 = vector.load %arg22[%c0_115, %c0_116] : memref<32x32xf32, #tpu.memory_space<vmem>>, vector<32x32xf32>
    %cst_117 = arith.constant dense<0.000000e+00> : vector<2x32xf32>
    %267 = tpu.matmul %265, %266, %cst_117 {dimension_numbers = #tpu.dot_dimension_numbers<[1], [0], [0], [1], [0, 0, 1, 1], [], []>} : vector<2x32xf32>, vector<32x32xf32>, vector<2x32xf32> -> vector<2x32xf32>
    %c0_118 = arith.constant 0 : index
    %c0_119 = arith.constant 0 : index
    %268 = vector.load %arg23[%c0_118, %c0_119] : memref<1x32xf32, #tpu.memory_space<vmem>>, vector<1x32xf32>
    %269 = vector.broadcast %268 : vector<1x32xf32> to vector<2x32xf32>
    %270 = arith.addf %267, %269 : vector<2x32xf32>
    %cst_120 = arith.constant 0.000000e+00 : f32
    %271 = vector.broadcast %cst_120 : f32 to vector<2x32xf32>
    %272 = arith.maximumf %270, %271 : vector<2x32xf32>
    %c0_121 = arith.constant 0 : index
    %c0_122 = arith.constant 0 : index
    %273 = vector.load %arg24[%c0_121, %c0_122] : memref<32x32xf32, #tpu.memory_space<vmem>>, vector<32x32xf32>
    %cst_123 = arith.constant dense<0.000000e+00> : vector<2x32xf32>
    %274 = tpu.matmul %272, %273, %cst_123 {dimension_numbers = #tpu.dot_dimension_numbers<[1], [0], [0], [1], [0, 0, 1, 1], [], []>} : vector<2x32xf32>, vector<32x32xf32>, vector<2x32xf32> -> vector<2x32xf32>
    %c0_124 = arith.constant 0 : index
    %c0_125 = arith.constant 0 : index
    %275 = vector.load %arg25[%c0_124, %c0_125] : memref<1x32xf32, #tpu.memory_space<vmem>>, vector<1x32xf32>
    %276 = vector.broadcast %275 : vector<1x32xf32> to vector<2x32xf32>
    %277 = arith.addf %274, %276 : vector<2x32xf32>
    %cst_126 = arith.constant 0.000000e+00 : f32
    %278 = vector.broadcast %cst_126 : f32 to vector<2x32xf32>
    %279 = arith.maximumf %277, %278 : vector<2x32xf32>
    %c0_127 = arith.constant 0 : index
    %c0_128 = arith.constant 0 : index
    %280 = vector.load %arg26[%c0_127, %c0_128] : memref<32x32xf32, #tpu.memory_space<vmem>>, vector<32x32xf32>
    %cst_129 = arith.constant dense<0.000000e+00> : vector<2x32xf32>
    %281 = tpu.matmul %279, %280, %cst_129 {dimension_numbers = #tpu.dot_dimension_numbers<[1], [0], [0], [1], [0, 0, 1, 1], [], []>} : vector<2x32xf32>, vector<32x32xf32>, vector<2x32xf32> -> vector<2x32xf32>
    %c0_130 = arith.constant 0 : index
    %c0_131 = arith.constant 0 : index
    %282 = vector.load %arg27[%c0_130, %c0_131] : memref<1x32xf32, #tpu.memory_space<vmem>>, vector<1x32xf32>
    %283 = vector.broadcast %282 : vector<1x32xf32> to vector<2x32xf32>
    %284 = arith.addf %281, %283 : vector<2x32xf32>
    %cst_132 = arith.constant 0.000000e+00 : f32
    %285 = vector.broadcast %cst_132 : f32 to vector<2x32xf32>
    %286 = arith.maximumf %284, %285 : vector<2x32xf32>
    %c0_133 = arith.constant 0 : index
    %c0_134 = arith.constant 0 : index
    %287 = vector.load %arg28[%c0_133, %c0_134] : memref<32x6xf32, #tpu.memory_space<vmem>>, vector<32x6xf32>
    %cst_135 = arith.constant dense<0.000000e+00> : vector<2x6xf32>
    %288 = tpu.matmul %286, %287, %cst_135 {dimension_numbers = #tpu.dot_dimension_numbers<[1], [0], [0], [1], [0, 0, 1, 1], [], []>} : vector<2x32xf32>, vector<32x6xf32>, vector<2x6xf32> -> vector<2x6xf32>
    %c0_136 = arith.constant 0 : index
    %c0_137 = arith.constant 0 : index
    %289 = vector.load %arg29[%c0_136, %c0_137] : memref<1x6xf32, #tpu.memory_space<vmem>>, vector<1x6xf32>
    %290 = vector.broadcast %289 : vector<1x6xf32> to vector<2x6xf32>
    %291 = arith.addf %288, %290 : vector<2x6xf32>
    %c0_138 = arith.constant 0 : index
    %c0_139 = arith.constant 0 : index
    %292 = vector.load %arg30[%c0_138, %c0_139] : memref<2x6xf32, #tpu.memory_space<vmem>>, vector<2x6xf32>
    tpu.vector_store %arg30[%c0_138, %c0_139], %291 {strides = array<i32>} : memref<2x6xf32, #tpu.memory_space<vmem>>, vector<2x6xf32>,
    return
  }
  func.func @transform_0(%arg0: i32) -> (i32, i32) {
    %c0_i32 = arith.constant 0 : i32
    %c0_i32_0 = arith.constant 0 : i32
    return %arg0, %c0_i32 : i32, i32
  }
  func.func @transform_1(%arg0: i32) -> (i32, i32) {
    %c0_i32 = arith.constant 0 : i32
    %c0_i32_0 = arith.constant 0 : i32
    %c0_i32_1 = arith.constant 0 : i32
    return %c0_i32, %c0_i32_0 : i32, i32
  }
  func.func @transform_2(%arg0: i32) -> (i32, i32) {
    %c0_i32 = arith.constant 0 : i32
    %c0_i32_0 = arith.constant 0 : i32
    %c0_i32_1 = arith.constant 0 : i32
    return %c0_i32, %c0_i32_0 : i32, i32
  }
  func.func @transform_3(%arg0: i32) -> (i32, i32) {
    %c0_i32 = arith.constant 0 : i32
    %c0_i32_0 = arith.constant 0 : i32
    %c0_i32_1 = arith.constant 0 : i32
    return %c0_i32, %c0_i32_0 : i32, i32
  }
  func.func @transform_4(%arg0: i32) -> (i32, i32) {
    %c0_i32 = arith.constant 0 : i32
    %c0_i32_0 = arith.constant 0 : i32
    %c0_i32_1 = arith.constant 0 : i32
    return %c0_i32, %c0_i32_0 : i32, i32
  }
  func.func @transform_5(%arg0: i32) -> (i32, i32) {
    %c0_i32 = arith.constant 0 : i32
    %c0_i32_0 = arith.constant 0 : i32
    %c0_i32_1 = arith.constant 0 : i32
    return %c0_i32, %c0_i32_0 : i32, i32
  }
  func.func @transform_6(%arg0: i32) -> (i32, i32) {
    %c0_i32 = arith.constant 0 : i32
    %c0_i32_0 = arith.constant 0 : i32
    %c0_i32_1 = arith.constant 0 : i32
    return %c0_i32, %c0_i32_0 : i32, i32
  }
  func.func @transform_7(%arg0: i32) -> (i32, i32) {
    %c0_i32 = arith.constant 0 : i32
    %c0_i32_0 = arith.constant 0 : i32
    %c0_i32_1 = arith.constant 0 : i32
    return %c0_i32, %c0_i32_0 : i32, i32
  }
  func.func @transform_8(%arg0: i32) -> (i32, i32) {
    %c0_i32 = arith.constant 0 : i32
    %c0_i32_0 = arith.constant 0 : i32
    %c0_i32_1 = arith.constant 0 : i32
    return %c0_i32, %c0_i32_0 : i32, i32
  }
  func.func @transform_9(%arg0: i32) -> (i32, i32) {
    %c0_i32 = arith.constant 0 : i32
    %c0_i32_0 = arith.constant 0 : i32
    %c0_i32_1 = arith.constant 0 : i32
    return %c0_i32, %c0_i32_0 : i32, i32
  }
  func.func @transform_10(%arg0: i32) -> (i32, i32) {
    %c0_i32 = arith.constant 0 : i32
    %c0_i32_0 = arith.constant 0 : i32
    %c0_i32_1 = arith.constant 0 : i32
    return %c0_i32, %c0_i32_0 : i32, i32
  }
  func.func @transform_11(%arg0: i32) -> (i32, i32) {
    %c0_i32 = arith.constant 0 : i32
    %c0_i32_0 = arith.constant 0 : i32
    %c0_i32_1 = arith.constant 0 : i32
    return %c0_i32, %c0_i32_0 : i32, i32
  }
  func.func @transform_12(%arg0: i32) -> (i32, i32) {
    %c0_i32 = arith.constant 0 : i32
    %c0_i32_0 = arith.constant 0 : i32
    %c0_i32_1 = arith.constant 0 : i32
    return %c0_i32, %c0_i32_0 : i32, i32
  }
  func.func @transform_13(%arg0: i32) -> (i32, i32) {
    %c0_i32 = arith.constant 0 : i32
    %c0_i32_0 = arith.constant 0 : i32
    %c0_i32_1 = arith.constant 0 : i32
    return %c0_i32, %c0_i32_0 : i32, i32
  }
  func.func @transform_14(%arg0: i32) -> (i32, i32) {
    %c0_i32 = arith.constant 0 : i32
    %c0_i32_0 = arith.constant 0 : i32
    %c0_i32_1 = arith.constant 0 : i32
    return %c0_i32, %c0_i32_0 : i32, i32
  }
  func.func @transform_15(%arg0: i32) -> (i32, i32) {
    %c0_i32 = arith.constant 0 : i32
    %c0_i32_0 = arith.constant 0 : i32
    %c0_i32_1 = arith.constant 0 : i32
    return %c0_i32, %c0_i32_0 : i32, i32
  }
  func.func @transform_16(%arg0: i32) -> (i32, i32) {
    %c0_i32 = arith.constant 0 : i32
    %c0_i32_0 = arith.constant 0 : i32
    %c0_i32_1 = arith.constant 0 : i32
    return %c0_i32, %c0_i32_0 : i32, i32
  }
  func.func @transform_17(%arg0: i32) -> (i32, i32) {
    %c0_i32 = arith.constant 0 : i32
    %c0_i32_0 = arith.constant 0 : i32
    %c0_i32_1 = arith.constant 0 : i32
    return %c0_i32, %c0_i32_0 : i32, i32
  }
  func.func @transform_18(%arg0: i32) -> (i32, i32) {
    %c0_i32 = arith.constant 0 : i32
    %c0_i32_0 = arith.constant 0 : i32
    %c0_i32_1 = arith.constant 0 : i32
    return %c0_i32, %c0_i32_0 : i32, i32
  }
  func.func @transform_19(%arg0: i32) -> (i32, i32) {
    %c0_i32 = arith.constant 0 : i32
    %c0_i32_0 = arith.constant 0 : i32
    %c0_i32_1 = arith.constant 0 : i32
    return %c0_i32, %c0_i32_0 : i32, i32
  }
  func.func @transform_20(%arg0: i32) -> (i32, i32) {
    %c0_i32 = arith.constant 0 : i32
    %c0_i32_0 = arith.constant 0 : i32
    %c0_i32_1 = arith.constant 0 : i32
    return %c0_i32, %c0_i32_0 : i32, i32
  }
  func.func @transform_21(%arg0: i32) -> (i32, i32) {
    %c0_i32 = arith.constant 0 : i32
    %c0_i32_0 = arith.constant 0 : i32
    %c0_i32_1 = arith.constant 0 : i32
    return %c0_i32, %c0_i32_0 : i32, i32
  }
  func.func @transform_22(%arg0: i32) -> (i32, i32) {
    %c0_i32 = arith.constant 0 : i32
    %c0_i32_0 = arith.constant 0 : i32
    %c0_i32_1 = arith.constant 0 : i32
    return %c0_i32, %c0_i32_0 : i32, i32
  }
  func.func @transform_23(%arg0: i32) -> (i32, i32) {
    %c0_i32 = arith.constant 0 : i32
    %c0_i32_0 = arith.constant 0 : i32
    %c0_i32_1 = arith.constant 0 : i32
    return %c0_i32, %c0_i32_0 : i32, i32
  }
  func.func @transform_24(%arg0: i32) -> (i32, i32) {
    %c0_i32 = arith.constant 0 : i32
    %c0_i32_0 = arith.constant 0 : i32
    %c0_i32_1 = arith.constant 0 : i32
    return %c0_i32, %c0_i32_0 : i32, i32
  }
  func.func @transform_25(%arg0: i32) -> (i32, i32) {
    %c0_i32 = arith.constant 0 : i32
    %c0_i32_0 = arith.constant 0 : i32
    %c0_i32_1 = arith.constant 0 : i32
    return %c0_i32, %c0_i32_0 : i32, i32
  }
  func.func @transform_26(%arg0: i32) -> (i32, i32) {
    %c0_i32 = arith.constant 0 : i32
    %c0_i32_0 = arith.constant 0 : i32
    %c0_i32_1 = arith.constant 0 : i32
    return %c0_i32, %c0_i32_0 : i32, i32
  }
  func.func @transform_27(%arg0: i32) -> (i32, i32) {
    %c0_i32 = arith.constant 0 : i32
    %c0_i32_0 = arith.constant 0 : i32
    %c0_i32_1 = arith.constant 0 : i32
    return %c0_i32, %c0_i32_0 : i32, i32
  }
  func.func @transform_28(%arg0: i32) -> (i32, i32) {
    %c0_i32 = arith.constant 0 : i32
    %c0_i32_0 = arith.constant 0 : i32
    %c0_i32_1 = arith.constant 0 : i32
    return %c0_i32, %c0_i32_0 : i32, i32
  }
  func.func @transform_29(%arg0: i32) -> (i32, i32) {
    %c0_i32 = arith.constant 0 : i32
    %c0_i32_0 = arith.constant 0 : i32
    return %arg0, %c0_i32 : i32, i32
  }
}

</mosaic_0001>

<bundles_post_ra>
// kernel: tpu_custom_call.1
= control target key start
LH: loop header
LB: loop body
LE: loop exit
PB: predicated region body
PF: predicated region fallthrough
CT: control target
= control target key end

     0   :  { %s1726_s6 = smov 1   ;;  %s1727_s10 = smov 2   ;;  %s2418_s0 = inlined_call_operand.smem [shape: u32[30], index: -1, kind: input, shape index: {}] }
   0x1   :  { %s1771_s5 = sld [smem:[%s2418_s0]]   ;;  %s1728_s14 = smov 3  }
   0x2   :  { %s1776_s9 = sld [smem:[%s2418_s0 + %s1726_s6]]   ;;  %s1729_s18 = smov 4  }
   0x3   :  { %s1781_s13 = sld [smem:[%s2418_s0 + %s1727_s10]]   ;;  %s1730_s22 = smov 5  }
   0x4   :  { %s1786_s17 = sld [smem:[%s2418_s0 + %s1728_s14]]   ;;  %s1731_s26 = smov 6  }
   0x5   :  { %s1791_s21 = sld [smem:[%s2418_s0 + %s1729_s18]]   ;;  %s1732_s30 = smov 7  }
   0x6   :  { %s1796_s25 = sld [smem:[%s2418_s0 + %s1730_s22]]   ;;  %s1733_s4 = smov 8  }
   0x7   :  { %s1801_s29 = sld [smem:[%s2418_s0 + %s1731_s26]]   ;;  %s1734_s10 = smov 9  }
   0x8   :  { %s1806_s3 = sld [smem:[%s2418_s0 + %s1732_s30]]   ;;  %s1735_s15 = smov 10  }
   0x9   :  { %s1811_s8 = sld [smem:[%s2418_s0 + %s1733_s4]]   ;;  %s1736_s20 = smov 11  }
   0xa   :  { %s1816_s14 = sld [smem:[%s2418_s0 + %s1734_s10]]   ;;  %s1737_s26 = smov 12  }
   0xb   :  { %s1821_s19 = sld [smem:[%s2418_s0 + %s1735_s15]]   ;;  %s1738_s1 = smov 13  }
   0xc   :  { %s1826_s24 = sld [smem:[%s2418_s0 + %s1736_s20]]   ;;  %s1739_s7 = smov 14  }
   0xd   :  { %s1831_s30 = sld [smem:[%s2418_s0 + %s1737_s26]]   ;;  %s1740_s15 = smov 15  }
   0xe   :  { %s1836_s6 = sld [smem:[%s2418_s0 + %s1738_s1]]   ;;  %s1741_s22 = smov 16  }
   0xf   :  { %s1841_s12 = sld [smem:[%s2418_s0 + %s1739_s7]]   ;;  %s1742_s28 = smov 17  }
  0x10   :  { %s1846_s20 = sld [smem:[%s2418_s0 + %s1740_s15]]   ;;  %s1743_s7 = smov 18  }
  0x11   :  { %s1851_s27 = sld [smem:[%s2418_s0 + %s1741_s22]]   ;;  %s1744_s15 = smov 19  }
  0x12   :  { %s1856_s4 = sld [smem:[%s2418_s0 + %s1742_s28]]   ;;  %s1745_s22 = smov 20  }
  0x13   :  { %s1746_s28 = smov 21  }
  0x15   :  { %2425 = sst [smem:[#allocation5_spill]] %s1841_s12 }
  0x16   :  { %2426 = sst [smem:[#allocation6_spill]] %s1846_s20 }
  0x17   :  { %2427 = sst [smem:[#allocation7_spill]] %s1851_s27 }
  0x18   :  { %2428 = sst [smem:[#allocation8_spill]] %s1856_s4 }
  0x19   :  { %s1861_s12 = sld [smem:[%s2418_s0 + %s1743_s7]]   ;;  %s1747_s7 = smov 22  }
  0x1a   :  { %s1866_s20 = sld [smem:[%s2418_s0 + %s1744_s15]]   ;;  %s1748_s15 = smov 23  }
  0x1b   :  { %s1871_s27 = sld [smem:[%s2418_s0 + %s1745_s22]]   ;;  %s1749_s22 = smov 24  }
  0x1c   :  { %s1876_s4 = sld [smem:[%s2418_s0 + %s1746_s28]]   ;;  %s1750_s28 = smov 25  }
  0x1f   :  { %2429 = sst [smem:[#allocation9_spill]] %s1861_s12 }
  0x20   :  { %2430 = sst [smem:[#allocation10_spill]] %s1866_s20 }
  0x21   :  { %2431 = sst [smem:[#allocation11_spill]] %s1871_s27 }
  0x22   :  { %2432 = sst [smem:[#allocation12_spill]] %s1876_s4 }
  0x23   :  { %s1881_s12 = sld [smem:[%s2418_s0 + %s1747_s7]]   ;;  %s1751_s7 = smov 26  }
  0x24   :  { %s1886_s20 = sld [smem:[%s2418_s0 + %s1748_s15]]   ;;  %s1752_s15 = smov 27  }
  0x25   :  { %s1891_s27 = sld [smem:[%s2418_s0 + %s1749_s22]]   ;;  %s1753_s22 = smov 28  }
  0x26   :  { %s1896_s4 = sld [smem:[%s2418_s0 + %s1750_s28]]   ;;  %s1754_s28 = smov 29  }
  0x29   :  { %2433 = sst [smem:[#allocation13_spill]] %s1881_s12 }
  0x2a   :  { %2434 = sst [smem:[#allocation14_spill]] %s1886_s20 }
  0x2b   :  { %2435 = sst [smem:[#allocation15_spill]] %s1891_s27 }
  0x2c   :  { %2436 = sst [smem:[#allocation16_spill]] %s1896_s4 }
  0x2d   :  { %s1901_s12 = sld [smem:[%s2418_s0 + %s1751_s7]]  }
  0x2e   :  { %s1906_s20 = sld [smem:[%s2418_s0 + %s1752_s15]]  }
  0x2f   :  { %s1911_s27 = sld [smem:[%s2418_s0 + %s1753_s22]]  }
  0x30   :  { %s1916_s4 = sld [smem:[%s2418_s0 + %s1754_s28]]  }
  0x31   :  { %v1919_v0 = vld [vmem:[%s1771_s5] sm:$0xff]  ;;  %v127_v1 = vlaneseq  ;;  %vm234_vm0 = vcmask 1040384   ;;  %v1922_v2 = vld [vmem:[%s1771_s5 + $0x8] sm:$0xff]  ;;  %v1925_v3 = vld [vmem:[%s1771_s5 + $0x10] sm:$0xff]  ;;  %s1755_s0 = smov 4  }
  0x32   :  { %v235_v4 = vrot.slane %v1919_v0, 7  ;;  %v236_v5 = vrot.slane %v1922_v2, 7  ;;  %v238_v9 = vrot.slane %v1925_v3, 7 }
  0x33   :  { %v128_v6 = vshrl.u32 %v127_v1, 7 }
  0x34   :  { %v246_v7 = vsel %vm234_vm0, 0.0, %v235_v4  ;;  %v237_v8 = vsel %vm234_vm0, %v235_v4, %v236_v5  ;;  %v239_v13 = vsel %vm234_vm0, %v236_v5, %v238_v9 }
  0x35   :  { %v1932_v10 = vand.u32 15, %v128_v6  ;;  %269 = vrot.lane.b32.xlu1 %v237_v8, %s1755_s0  ;;  %v130_v11 = vadd.s32 16, %v128_v6 }
  0x37   :  { %vm247_vm1 = vcmp.ge.s32.totalorder %v1932_v10, 1  ;;  %v1935_v12 = vand.u32 15, %v130_v11 }
  0x38   :  { %v259_v14 = vsel %vm247_vm1, %v246_v7, 0.0 }
  0x39   :  { %267 = vrot.lane.b32.xlu0 %v259_v14, %s1755_s0  ;;  %vm249_vm2 = vcmp.ge.s32.totalorder %v1935_v12, 1 }
  0x3a   :  { %v261_v15 = vsel %vm249_vm2, %v239_v13, 0.0 }
  0x3b   :  { %64 = vsyncpa [#allocation3], 0  ;;  %271 = vrot.lane.b32.xlu2 %v261_v15, %s1755_s0  ;;  %s1756_s7 = smov 8   ;;  %v1945_v16 = vld [vmem:[%s1771_s5 + $0x18] sm:$0xff]  ;;  %v181_v19 = vld [vmem:[%s1776_s9 + $0x8] sm:$0xf] }
  0x3c   :  { %v240_v17 = vrot.slane %v1945_v16, 7  ;;  %vm317_vm3 = vcmask 1043456   ;;  %v180_v20 = vld [vmem:[%s1776_s9] sm:$0xff]  ;;  %v206_v21 = vrot.slane %v1919_v0, 6  ;;  %vm205_vm4 = vcmask 1041408   ;;  %v197_v50 = vld [vmem:[%s1786_s17 + $0x70] sm:$0xff] }
  0x3d   :  { %281 = vrot.lane.b32.xlu1 %v1922_v2, %s1756_s7  ;;  %1603 = vmatpush.msk.msra.mxu0 %vm317_vm3, %v181_v19  ;;  %vm218_vm5 = vcmp.ge.s32.totalorder %v1932_v10, 2  ;;  %vm291_vm6 = vcmask 31744   ;;  %vm296_vm7 = vcmask 64512   ;;  %v207_v26 = vrot.slane %v1922_v2, 6  ;;  %v1686_v47 = vld [vmem:[%s1781_s13] ss:$0 sm:$0xff] }
  0x3e   :  { %v241_v18 = vsel %vm234_vm0, %v238_v9, %v240_v17  ;;  %v217_v23 = vsel %vm205_vm4, 0.0, %v206_v21  ;;  %vm304_vm8 = vcmask 97280   ;;  %v209_v31 = vrot.slane %v1925_v3, 6  ;;  %v196_v51 = vld [vmem:[%s1786_s17 + $0x68] sm:$0xff]  ;;  %453 = vmatpush.msra.mxu1 %v197_v50  ;;  %v195_v53 = vld [vmem:[%s1786_s17 + $0x60] sm:$0xff]  ;;  %s1757_s5 = smov 80  }
  0x3f   :  { %336 = vmatpush.msra.mxu0 %v180_v20  ;;  %v230_v25 = vsel %vm218_vm5, %v217_v23, 0.0  ;;  %v208_v30 = vsel %vm205_vm4, %v206_v21, %v207_v26  ;;  %vm220_vm9 = vcmp.ge.s32.totalorder %v1935_v12, 2  ;;  %v211_v38 = vrot.slane %v1945_v16, 6  ;;  %v194_v56 = vld [vmem:[%s1786_s17 + $0x58] sm:$0xff]  ;;  %s1758_s9 = smov 40   ;;  %s2437_s13 = sld [smem:[#allocation10_spill]] }
  0x40   :  { %v210_v35 = vsel %vm205_vm4, %v207_v26, %v209_v31  ;;  %454 = vmatpush.msra.mxu1 %v196_v51  ;;  %vm426_vm14 = vcmask 326656   ;;  %vm431_vm15 = vcmask 654336   ;;  %s2447_s10 = sld [smem:[#allocation13_spill]]  ;;  %s1762_s15 = smov [#allocation2]  }
  0x41   :  { %279 = vrot.lane.b32.xlu0 %v1919_v0, %s1756_s7  ;;  %v232_v37 = vsel %vm220_vm9, %v210_v35, 0.0  ;;  %v212_v42 = vsel %vm205_vm4, %v209_v31, %v211_v38  ;;  %v189_v31 = vld [vmem:[%s1786_s17 + $0x30] sm:$0xff]  ;;  %v186_v35 = vld [vmem:[%s1786_s17 + $0x18] sm:$0xff]  ;;  %v183_v38 = vld [vmem:[%s1786_s17] sm:$0xff]  ;;  %s2448_s11 = sld [smem:[#allocation15_spill]]  ;;  %s1565_s16 = sshll.u32 %s1916_s4, 4  ;;  %s1566_s16 = int_to_ptr.hbm [resolvable:$true] %s1565_s16 }
  0x42   :  { %455 = vmatpush.msra.mxu1 %v195_v53  ;;  %s1712_s18 = sshra.s32 %s1566_s16, 4  ;;  %s1716_s22 = scalar_lea.hbm %s1916_s4, 2  ;;  %s1713_s18 = int_to_ptr.hbm [resolvable:$true] %s1712_s18 }
  0x43   :  { %283 = vrot.lane.b32.xlu2 %v1925_v3, %s1756_s7  ;;  %p1717_p1 = scmp.lt.s32.totalorder %s1713_s18, %s1916_s4 }
  0x44   :  { %456 = vmatpush.msra.mxu1 %v194_v56 }
  0x45   :  { %285 = vrot.lane.b32.xlu1 %v1945_v16, %s1756_s7 }
  0x49   :  { %273 = vrot.lane.b32.xlu0 %v241_v18, %s1755_s0 }
  0x95   :  { %v272_v32 = vpop.permute.xlu2 %271 }
  0x96   :  { %v294_v39 = vsel %vm291_vm6, %v232_v37, %v272_v32  ;;  %v188_v32 = vld [vmem:[%s1786_s17 + $0x28] sm:$0xff] }
  0x97   :  { %v184_v37 = vld [vmem:[%s1786_s17 + $0x8] sm:$0xff] }
  0x9d   :  { %v284_v40 = vpop.permute.xlu2 %283 }
  0x9e   :  { %v299_v41 = vsel %vm296_vm7, %v294_v39, %v284_v40 }
  0xa7   :  { %v270_v24 = vpop.permute.xlu1 %269 }
  0xa8   :  { %v293_v33 = vsel %vm291_vm6, %v208_v30, %v270_v24  ;;  %v190_v30 = vld [vmem:[%s1786_s17 + $0x38] sm:$0xff] }
  0xab   :  { %v268_v22 = vpop.permute.xlu0 %267 }
  0xac   :  { %v292_v27 = vsel %vm291_vm6, %v230_v25, %v268_v22 }
  0xaf   :  { %v282_v34 = vpop.permute.xlu1 %281 }
  0xb0   :  { %v298_v36 = vsel %vm296_vm7, %v293_v33, %v282_v34  ;;  %v199_v33 = vld [vmem:[%s1796_s25] sm:$0xf]  ;;  %s2440_s25 = sld [smem:[#allocation7_spill]] }
  0xb1   :  { %v187_v34 = vld [vmem:[%s1786_s17 + $0x20] sm:$0xff]  ;;  %1612 = vmatpush.msk.msra.mxu2 %vm317_vm3, %v199_v33 }
  0xb2   :  { %1613 = vmatmul.msk.f32.vlgmr.msra.gmra.mxu2 %vm291_vm6, %v1919_v0 }
  0xb3   :  { %v280_v28 = vpop.permute.xlu0 %279 }
  0xb4   :  { %v297_v29 = vsel %vm296_vm7, %v292_v27, %v280_v28  ;;  %v193_v27 = vld [vmem:[%s1786_s17 + $0x50] sm:$0xff]  ;;  %v192_v28 = vld [vmem:[%s1786_s17 + $0x48] sm:$0xff] }
  0xb5   :  { %1604 = vmatmul.msk.f32.vlgmr.msra.gmra.mxu0 %vm304_vm8, %v297_v29  ;;  %457 = vmatpush.msra.mxu1 %v193_v27  ;;  %v191_v29 = vld [vmem:[%s1786_s17 + $0x40] sm:$0xff] }
  0xb7   :  { %v286_v45 = vpop.permute.xlu1 %285  ;;  %458 = vmatpush.msra.mxu1 %v192_v28 }
  0xb9   :  { %459 = vmatpush.msra.mxu1 %v191_v29 }
  0xba   :  { %1614 = vmatmul.msk.f32.gmra.mxu2 %vm291_vm6, %v1922_v2 }
  0xbb   :  { %v274_v43 = vpop.permute.xlu0 %273  ;;  %460 = vmatpush.msra.mxu1 %v190_v30 }
  0xbc   :  { %v295_v44 = vsel %vm291_vm6, %v212_v42, %v274_v43 }
  0xbd   :  { %1605 = vmatmul.msk.f32.gmra.mxu0 %vm304_vm8, %v298_v36  ;;  %v300_v46 = vsel %vm296_vm7, %v295_v44, %v286_v45  ;;  %461 = vmatpush.msra.mxu1 %v189_v31  ;;  %v185_v36 = vld [vmem:[%s1786_s17 + $0x10] sm:$0xff]  ;;  %s2438_s17 = sld [smem:[#allocation5_spill]] }
  0xbf   :  { %462 = vmatpush.msra.mxu1 %v188_v32 }
  0xc1   :  { %463 = vmatpush.msra.mxu1 %v187_v34 }
  0xc2   :  { %1615 = vmatmul.msk.f32.gmra.mxu2 %vm291_vm6, %v1925_v3 }
  0xc3   :  { %464 = vmatpush.msra.mxu1 %v186_v35 }
  0xc5   :  { %1606 = vmatmul.msk.f32.gmra.mxu0 %vm304_vm8, %v299_v41  ;;  %465 = vmatpush.msra.mxu1 %v185_v36  ;;  %v554_v36 = vld [vmem:[%s1806_s3 + $0x70] sm:$0xff] }
  0xc6   :  { %672 = vmatpush.msra.mxu3 %v554_v36  ;;  %v564_v36 = vld [vmem:[%s1816_s14 + $0x40] sm:$0xff] }
  0xc7   :  { %466 = vmatpush.msra.mxu1 %v184_v37  ;;  %v553_v37 = vld [vmem:[%s1806_s3 + $0x68] sm:$0xff] }
  0xc8   :  { %673 = vmatpush.msra.mxu3 %v553_v37 }
  0xc9   :  { %467 = vmatpush.msra.mxu1 %v183_v38  ;;  %v552_v38 = vld [vmem:[%s1806_s3 + $0x60] sm:$0xff] }
  0xca   :  { %1616 = vmatmul.msk.f32.gmra.mxu2 %vm291_vm6, %v1945_v16  ;;  %674 = vmatpush.msra.mxu3 %v552_v38 }
  0xcd   :  { %1607 = vmatmul.msk.f32.gmra.mxu0 %vm304_vm8, %v300_v46  ;;  %vm588_vm8 = vcmp.ge.s32.totalorder %v1932_v10, 4 }
 0x132   :  { %v338_v48 = vpop.f32.mrf.mxu0 }
 0x133   :  { %v339_v49 = vadd.f32 %v1686_v47, %v338_v48 }
 0x135   :  { %v354_v52 = vmul.f32 0.01, %v339_v49  ;;  %vm350_vm10 = vcmp.ge.f32.partialorder %v339_v49, 0.0  ;;  %v524_v56 = vpop.f32.mrf.mxu2 }
 0x137   :  { %v1985_v54 = vsel %vm350_vm10, %v339_v49, %v354_v52  ;;  %vm590_vm10 = vcmp.ge.s32.totalorder %v1935_v12, 4  ;;  %v873_v12 = vld [vmem:[%s1836_s6 + $0x68] sm:$0xff] }
 0x138   :  { %414 = vrot.lane.b32.xlu0 %v1985_v54, %s1757_s5  ;;  %v382_v55 = vrot.slane %v1985_v54, 7  ;;  %v366_v63 = vrot.slane %v1985_v54, 6  ;;  %v1687_v54 = vld [vmem:[%s1791_s21] ss:$0 sm:$0xff]  ;;  %s2439_s21 = sld [smem:[#allocation6_spill]] }
 0x13a   :  { %v341_v57 = vpop.f32.mrf.mxu0  ;;  %v393_v58 = vsel %vm234_vm0, 0.0, %v382_v55  ;;  %v377_v0 = vsel %vm205_vm4, 0.0, %v366_v63 }
 0x13b   :  { %v342_v59 = vadd.f32 %v1686_v47, %v341_v57  ;;  %v394_v60 = vsel %vm247_vm1, %v393_v58, 0.0  ;;  %v378_v40 = vsel %vm218_vm5, %v377_v0, 0.0  ;;  %v551_v0 = vld [vmem:[%s1806_s3 + $0x58] sm:$0xff] }
 0x13c   :  { %402 = vrot.lane.b32.xlu2 %v394_v60, %s1758_s9  ;;  %675 = vmatpush.msra.mxu3 %v551_v0 }
 0x13d   :  { %vm351_vm11 = vcmp.ge.f32.partialorder %v342_v59, 0.0  ;;  %v355_v61 = vmul.f32 0.01, %v342_v59 }
 0x13f   :  { %v359_v62 = vsel %vm351_vm11, %v342_v59, %v355_v61 }
 0x140   :  { %v367_v1 = vrot.slane %v359_v62, 6  ;;  %v383_v4 = vrot.slane %v359_v62, 7 }
 0x142   :  { %v344_v5 = vpop.f32.mrf.mxu0  ;;  %v384_v6 = vsel %vm234_vm0, %v382_v55, %v383_v4  ;;  %v1998_v7 = vsel %vm205_vm4, %v366_v63, %v367_v1  ;;  %v1688_v55 = vld [vmem:[%s1801_s29] ss:$0 sm:$0xff]  ;;  %s1760_s29 = smov 32  }
 0x143   :  { %v345_v8 = vadd.f32 %v1686_v47, %v344_v5  ;;  %404 = vrot.lane.b32.xlu1 %v384_v6, %s1758_s9  ;;  %v525_v59 = vadd.f32 %v1688_v55, %v524_v56 }
 0x144   :  { %416 = vrot.lane.b32.xlu2 %v359_v62, %s1757_s5 }
 0x145   :  { %v356_v9 = vmul.f32 0.01, %v345_v8  ;;  %vm352_vm12 = vcmp.ge.f32.partialorder %v345_v8, 0.0 }
 0x147   :  { %v360_v11 = vsel %vm352_vm12, %v345_v8, %v356_v9 }
 0x148   :  { %v369_v13 = vrot.slane %v360_v11, 6  ;;  %v385_v14 = vrot.slane %v360_v11, 7 }
 0x14a   :  { %v347_v15 = vpop.f32.mrf.mxu0  ;;  %v386_v17 = vsel %vm234_vm0, %v383_v4, %v385_v14  ;;  %v370_v18 = vsel %vm205_vm4, %v367_v1, %v369_v13  ;;  %v527_v1 = vpop.f32.mrf.mxu2 }
 0x14b   :  { %v348_v19 = vadd.f32 %v1686_v47, %v347_v15  ;;  %418 = vrot.lane.b32.xlu1 %v360_v11, %s1757_s5  ;;  %v396_v20 = vsel %vm249_vm2, %v386_v17, 0.0  ;;  %v380_v46 = vsel %vm220_vm9, %v370_v18, 0.0  ;;  %v528_v8 = vadd.f32 %v1688_v55, %v527_v1 }
 0x14c   :  { %406 = vrot.lane.b32.xlu0 %v396_v20, %s1758_s9 }
 0x14d   :  { %vm353_vm13 = vcmp.ge.f32.partialorder %v348_v19, 0.0  ;;  %v357_v21 = vmul.f32 0.01, %v348_v19 }
 0x14f   :  { %v361_v22 = vsel %vm353_vm13, %v348_v19, %v357_v21 }
 0x150   :  { %v371_v23 = vrot.slane %v361_v22, 6  ;;  %v387_v24 = vrot.slane %v361_v22, 7 }
 0x152   :  { %v388_v25 = vsel %vm234_vm0, %v385_v14, %v387_v24  ;;  %v372_v26 = vsel %vm205_vm4, %v369_v13, %v371_v23  ;;  %vm439_vm0 = vcmask 982016   ;;  %v530_v14 = vpop.f32.mrf.mxu2 }
 0x153   :  { %408 = vrot.lane.b32.xlu2 %v388_v25, %s1758_s9  ;;  %v531_v20 = vadd.f32 %v1688_v55, %v530_v14 }
 0x154   :  { %420 = vrot.lane.b32.xlu0 %v361_v22, %s1757_s5 }
 0x15a   :  { %v533_v24 = vpop.f32.mrf.mxu2 }
 0x15b   :  { %v534_v28 = vadd.f32 %v1688_v55, %v533_v24  ;;  %v569_v24 = vld [vmem:[%s1816_s14 + $0x68] sm:$0xff] }
 0x196   :  { %v403_v39 = vpop.permute.xlu2 %402 }
 0x197   :  { %v427_v41 = vsel %vm426_vm14, %v378_v40, %v403_v39  ;;  %v550_v39 = vld [vmem:[%s1806_s3 + $0x50] sm:$0xff]  ;;  %v549_v40 = vld [vmem:[%s1806_s3 + $0x48] sm:$0xff] }
 0x198   :  { %676 = vmatpush.msra.mxu3 %v550_v39 }
 0x19a   :  { %677 = vmatpush.msra.mxu3 %v549_v40 }
 0x19e   :  { %v417_v43 = vpop.permute.xlu2 %416 }
 0x1aa   :  { %v415_v2 = vpop.permute.xlu0 %414 }
 0x1ab   :  { %v432_v42 = vsel %vm431_vm15, %v427_v41, %v415_v2  ;;  %v548_v41 = vld [vmem:[%s1806_s3 + $0x40] sm:$0xff]  ;;  %v547_v2 = vld [vmem:[%s1806_s3 + $0x38] sm:$0xff] }
 0x1ac   :  { %1608 = vmatmul.msk.f32.vlgmr.msra.gmra.mxu1 %vm439_vm0, %v432_v42  ;;  %678 = vmatpush.msra.mxu3 %v548_v41  ;;  %v546_v42 = vld [vmem:[%s1806_s3 + $0x30] sm:$0xff] }
 0x1ad   :  { %v409_v50 = vpop.permute.xlu2 %408 }
 0x1ae   :  { %v430_v51 = vsel %vm426_vm14, %v372_v26, %v409_v50  ;;  %679 = vmatpush.msra.mxu3 %v547_v2 }
 0x1b0   :  { %680 = vmatpush.msra.mxu3 %v546_v42 }
 0x1b5   :  { %v405_v3 = vpop.permute.xlu1 %404 }
 0x1b6   :  { %v428_v16 = vsel %vm426_vm14, %v1998_v7, %v405_v3  ;;  %v545_v3 = vld [vmem:[%s1806_s3 + $0x28] sm:$0xff] }
 0x1b7   :  { %v433_v44 = vsel %vm431_vm15, %v428_v16, %v417_v43  ;;  %v544_v43 = vld [vmem:[%s1806_s3 + $0x20] sm:$0xff]  ;;  %681 = vmatpush.msra.mxu3 %v545_v3  ;;  %v543_v16 = vld [vmem:[%s1806_s3 + $0x18] sm:$0xff] }
 0x1b8   :  { %1609 = vmatmul.msk.f32.gmra.mxu1 %vm439_vm0, %v433_v44  ;;  %v542_v44 = vld [vmem:[%s1806_s3 + $0x10] sm:$0xff] }
 0x1b9   :  { %682 = vmatpush.msra.mxu3 %v544_v43 }
 0x1bb   :  { %683 = vmatpush.msra.mxu3 %v543_v16 }
 0x1bd   :  { %v419_v47 = vpop.permute.xlu1 %418  ;;  %684 = vmatpush.msra.mxu3 %v542_v44 }
 0x1be   :  { %v407_v45 = vpop.permute.xlu0 %406 }
 0x1bf   :  { %v429_v48 = vsel %vm426_vm14, %v380_v46, %v407_v45  ;;  %v541_v45 = vld [vmem:[%s1806_s3 + $0x8] sm:$0xff]  ;;  %v540_v46 = vld [vmem:[%s1806_s3] sm:$0xff]  ;;  %s2441_s3 = sld [smem:[#allocation8_spill]] }
 0x1c0   :  { %v434_v49 = vsel %vm431_vm15, %v429_v48, %v419_v47  ;;  %685 = vmatpush.msra.mxu3 %v541_v45 }
 0x1c1   :  { %1610 = vmatmul.msk.f32.gmra.mxu1 %vm439_vm0, %v434_v49 }
 0x1c2   :  { %686 = vmatpush.msra.mxu3 %v540_v46 }
 0x1c6   :  { %v421_v52 = vpop.permute.xlu0 %420 }
 0x1c7   :  { %v435_v53 = vsel %vm431_vm15, %v430_v51, %v421_v52 }
 0x1c9   :  { %1611 = vmatmul.msk.f32.gmra.mxu1 %vm439_vm0, %v435_v53 }
 0x229   :  { %v469_v57 = vpop.f32.mrf.mxu1 }
 0x22a   :  { %v470_v58 = vadd.f32 %v1687_v54, %v469_v57 }
 0x22c   :  { %vm481_vm1 = vcmp.ge.f32.partialorder %v470_v58, 0.0  ;;  %v485_v60 = vmul.f32 0.01, %v470_v58 }
 0x22e   :  { %v489_v61 = vsel %vm481_vm1, %v470_v58, %v485_v60 }
 0x22f   :  { %v2053_v62 = vadd.f32 %v525_v59, %v489_v61 }
 0x231   :  { %636 = vrot.lane.b32.xlu2 %v2053_v62, %s1757_s5  ;;  %v604_v63 = vrot.slane %v2053_v62, 6  ;;  %v576_v47 = vrot.slane %v2053_v62, 4 }
 0x233   :  { %v615_v4 = vsel %vm205_vm4, 0.0, %v604_v63  ;;  %v587_v48 = vsel %vm317_vm3, 0.0, %v576_v47 }
 0x234   :  { %v616_v5 = vsel %vm218_vm5, %v615_v4, 0.0  ;;  %v600_v49 = vsel %vm588_vm8, %v587_v48, 0.0 }
 0x235   :  { %624 = vrot.lane.b32.xlu1 %v616_v5, %s1758_s9  ;;  %v472_v6 = vpop.f32.mrf.mxu1 }
 0x236   :  { %v473_v7 = vadd.f32 %v1687_v54, %v472_v6 }
 0x238   :  { %vm482_vm2 = vcmp.ge.f32.partialorder %v473_v7, 0.0  ;;  %v486_v9 = vmul.f32 0.01, %v473_v7 }
 0x23a   :  { %v490_v11 = vsel %vm482_vm2, %v473_v7, %v486_v9 }
 0x23b   :  { %v2062_v13 = vadd.f32 %v528_v8, %v490_v11 }
 0x23d   :  { %638 = vrot.lane.b32.xlu1 %v2062_v13, %s1757_s5  ;;  %v605_v15 = vrot.slane %v2062_v13, 6 }
 0x23e   :  { %v475_v17 = vpop.f32.mrf.mxu1 }
 0x23f   :  { %v476_v18 = vadd.f32 %v1687_v54, %v475_v17  ;;  %v606_v19 = vsel %vm205_vm4, %v604_v63, %v605_v15  ;;  %v1689_v17 = vld [vmem:[%s1811_s8] ss:$0 sm:$0xff]  ;;  %s1761_s8 = smov 64  }
 0x240   :  { %626 = vrot.lane.b32.xlu0 %v606_v19, %s1758_s9 }
 0x241   :  { %vm483_vm6 = vcmp.ge.f32.partialorder %v476_v18, 0.0  ;;  %v487_v21 = vmul.f32 0.01, %v476_v18 }
 0x243   :  { %v491_v22 = vsel %vm483_vm6, %v476_v18, %v487_v21 }
 0x244   :  { %v2069_v23 = vadd.f32 %v531_v20, %v491_v22  ;;  %v570_v22 = vld [vmem:[%s1816_s14 + $0x70] sm:$0xff] }
 0x245   :  { %800 = vmatpush.msrb.mxu2 %v570_v22 }
 0x246   :  { %v478_v25 = vpop.f32.mrf.mxu1  ;;  %v607_v26 = vrot.slane %v2069_v23, 6  ;;  %v579_v55 = vrot.slane %v2069_v23, 4 }
 0x247   :  { %v479_v27 = vadd.f32 %v1687_v54, %v478_v25  ;;  %v577_v54 = vrot.slane %v2062_v13, 4  ;;  %801 = vmatpush.msrb.mxu2 %v569_v24 }
 0x248   :  { %640 = vrot.lane.b32.xlu0 %v2069_v23, %s1757_s5  ;;  %v608_v29 = vsel %vm205_vm4, %v605_v15, %v607_v26 }
 0x249   :  { %vm484_vm7 = vcmp.ge.f32.partialorder %v479_v27, 0.0  ;;  %v488_v30 = vmul.f32 0.01, %v479_v27  ;;  %v618_v31 = vsel %vm220_vm9, %v608_v29, 0.0  ;;  %v578_v57 = vsel %vm317_vm3, %v576_v47, %v577_v54  ;;  %v567_v29 = vld [vmem:[%s1816_s14 + $0x58] sm:$0xff] }
 0x24a   :  { %628 = vrot.lane.b32.xlu2 %v618_v31, %s1758_s9  ;;  %v580_v61 = vsel %vm317_vm3, %v577_v54, %v579_v55  ;;  %v566_v31 = vld [vmem:[%s1816_s14 + $0x50] sm:$0xff] }
 0x24b   :  { %v492_v32 = vsel %vm484_vm7, %v479_v27, %v488_v30  ;;  %v602_v1 = vsel %vm590_vm10, %v580_v61, 0.0  ;;  %v558_v61 = vld [vmem:[%s1816_s14 + $0x10] sm:$0xff] }
 0x24c   :  { %v2078_v33 = vadd.f32 %v534_v28, %v492_v32 }
 0x24e   :  { %v609_v34 = vrot.slane %v2078_v33, 6  ;;  %v581_v7 = vrot.slane %v2078_v33, 4 }
 0x250   :  { %v610_v35 = vsel %vm205_vm4, %v607_v26, %v609_v34  ;;  %v582_v8 = vsel %vm317_vm3, %v579_v55, %v581_v7  ;;  %v568_v26 = vld [vmem:[%s1816_s14 + $0x60] sm:$0xff]  ;;  %v565_v34 = vld [vmem:[%s1816_s14 + $0x48] sm:$0xff] }
 0x251   :  { %630 = vrot.lane.b32.xlu1 %v610_v35, %s1758_s9  ;;  %802 = vmatpush.msrb.mxu2 %v568_v26 }
 0x252   :  { %642 = vrot.lane.b32.xlu2 %v2078_v33, %s1757_s5 }
 0x253   :  { %803 = vmatpush.msrb.mxu2 %v567_v29 }
 0x255   :  { %804 = vmatpush.msrb.mxu2 %v566_v31 }
 0x257   :  { %805 = vmatpush.msrb.mxu2 %v565_v34 }
 0x259   :  { %806 = vmatpush.msrb.mxu2 %v564_v36  ;;  %v857_v36 = vld [vmem:[%s1826_s24 + $0x68] sm:$0xff] }
 0x28b   :  { %v637_v51 = vpop.permute.xlu2 %636 }
 0x2a4   :  { %v629_v63 = vpop.permute.xlu2 %628 }
 0x2a5   :  { %v650_v4 = vsel %vm426_vm14, %v602_v1, %v629_v63  ;;  %v557_v63 = vld [vmem:[%s1816_s14 + $0x8] sm:$0xff]  ;;  %v556_v1 = vld [vmem:[%s1816_s14] sm:$0xff] }
 0x2a7   :  { %v625_v50 = vpop.permute.xlu1 %624 }
 0x2a8   :  { %v648_v52 = vsel %vm426_vm14, %v600_v49, %v625_v50 }
 0x2a9   :  { %v652_v53 = vsel %vm431_vm15, %v648_v52, %v637_v51 }
 0x2aa   :  { %1617 = vmatmul.msk.f32.vlgmr.msra.gmra.mxu3 %vm439_vm0, %v652_v53 }
 0x2ac   :  { %v643_v11 = vpop.permute.xlu2 %642 }
 0x2af   :  { %v639_v58 = vpop.permute.xlu1 %638 }
 0x2b2   :  { %v627_v56 = vpop.permute.xlu0 %626 }
 0x2b3   :  { %v649_v59 = vsel %vm426_vm14, %v578_v57, %v627_v56  ;;  %v563_v56 = vld [vmem:[%s1816_s14 + $0x38] sm:$0xff]  ;;  %v562_v57 = vld [vmem:[%s1816_s14 + $0x30] sm:$0xff] }
 0x2b4   :  { %v653_v60 = vsel %vm431_vm15, %v649_v59, %v639_v58  ;;  %807 = vmatpush.msrb.mxu2 %v563_v56  ;;  %v561_v58 = vld [vmem:[%s1816_s14 + $0x28] sm:$0xff]  ;;  %v560_v59 = vld [vmem:[%s1816_s14 + $0x20] sm:$0xff] }
 0x2b5   :  { %1618 = vmatmul.msk.f32.gmra.mxu3 %vm439_vm0, %v653_v60  ;;  %v559_v60 = vld [vmem:[%s1816_s14 + $0x18] sm:$0xff]  ;;  %s2442_s14 = sld [smem:[#allocation12_spill]] }
 0x2b6   :  { %808 = vmatpush.msrb.mxu2 %v562_v57  ;;  %v854_v57 = vld [vmem:[%s1826_s24 + $0x50] sm:$0xff] }
 0x2b8   :  { %809 = vmatpush.msrb.mxu2 %v561_v58  ;;  %v853_v58 = vld [vmem:[%s1826_s24 + $0x48] sm:$0xff] }
 0x2ba   :  { %v641_v5 = vpop.permute.xlu0 %640  ;;  %810 = vmatpush.msrb.mxu2 %v560_v59  ;;  %v852_v59 = vld [vmem:[%s1826_s24 + $0x40] sm:$0xff] }
 0x2bb   :  { %v654_v6 = vsel %vm431_vm15, %v650_v4, %v641_v5 }
 0x2bc   :  { %811 = vmatpush.msrb.mxu2 %v559_v60  ;;  %v850_v60 = vld [vmem:[%s1826_s24 + $0x30] sm:$0xff] }
 0x2bd   :  { %1619 = vmatmul.msk.f32.gmra.mxu3 %vm439_vm0, %v654_v6 }
 0x2be   :  { %812 = vmatpush.msrb.mxu2 %v558_v61  ;;  %v849_v61 = vld [vmem:[%s1826_s24 + $0x28] sm:$0xff] }
 0x2c0   :  { %813 = vmatpush.msrb.mxu2 %v557_v63  ;;  %v848_v63 = vld [vmem:[%s1826_s24 + $0x20] sm:$0xff] }
 0x2c2   :  { %814 = vmatpush.msrb.mxu2 %v556_v1  ;;  %v847_v1 = vld [vmem:[%s1826_s24 + $0x18] sm:$0xff] }
 0x2c3   :  { %v631_v9 = vpop.permute.xlu1 %630 }
 0x2c4   :  { %v651_v14 = vsel %vm426_vm14, %v582_v8, %v631_v9 }
 0x2c5   :  { %v655_v15 = vsel %vm431_vm15, %v651_v14, %v643_v11 }
 0x2c6   :  { %1620 = vmatmul.msk.f32.gmra.mxu3 %vm439_vm0, %v655_v15 }
 0x32d   :  { %v688_v18 = vpop.f32.mrf.mxu3 }
 0x32e   :  { %v689_v19 = vadd.f32 %v1689_v17, %v688_v18 }
 0x330   :  { %v704_v20 = vmul.f32 0.01, %v689_v19  ;;  %vm700_vm11 = vcmp.ge.f32.partialorder %v689_v19, 0.0 }
 0x332   :  { %v2127_v21 = vsel %vm700_vm11, %v689_v19, %v704_v20 }
 0x333   :  { %v732_v25 = vrot.slane %v2127_v21, 6  ;;  %764 = vrot.lane.b32.xlu1 %v2127_v21, %s1757_s5  ;;  %v716_v38 = vrot.slane %v2127_v21, 4 }
 0x335   :  { %v743_v27 = vsel %vm205_vm4, 0.0, %v732_v25  ;;  %v727_v4 = vsel %vm317_vm3, 0.0, %v716_v38 }
 0x336   :  { %v744_v28 = vsel %vm218_vm5, %v743_v27, 0.0  ;;  %v728_v5 = vsel %vm588_vm8, %v727_v4, 0.0  ;;  %v846_v4 = vld [vmem:[%s1826_s24 + $0x10] sm:$0xff] }
 0x337   :  { %752 = vrot.lane.b32.xlu0 %v744_v28, %s1758_s9  ;;  %v1690_v28 = vld [vmem:[%s1821_s19] ss:$0 sm:$0xff]  ;;  %s2443_s19 = sld [smem:[#allocation9_spill]] }
 0x338   :  { %v691_v30 = vpop.f32.mrf.mxu3 }
 0x339   :  { %v692_v32 = vadd.f32 %v1689_v17, %v691_v30 }
 0x33b   :  { %v705_v35 = vmul.f32 0.01, %v692_v32  ;;  %vm701_vm12 = vcmp.ge.f32.partialorder %v692_v32, 0.0 }
 0x33d   :  { %v709_v37 = vsel %vm701_vm12, %v692_v32, %v705_v35  ;;  %v858_v35 = vld [vmem:[%s1826_s24 + $0x70] sm:$0xff] }
 0x33e   :  { %v717_v0 = vrot.slane %v709_v37, 4  ;;  %v733_v39 = vrot.slane %v709_v37, 6  ;;  %960 = vmatpush.msrb.mxu0 %v858_v35 }
 0x33f   :  { %766 = vrot.lane.b32.xlu0 %v709_v37, %s1757_s5 }
 0x340   :  { %v694_v40 = vpop.f32.mrf.mxu3  ;;  %v734_v41 = vsel %vm205_vm4, %v732_v25, %v733_v39  ;;  %v718_v2 = vsel %vm317_vm3, %v716_v38, %v717_v0  ;;  %961 = vmatpush.msrb.mxu0 %v857_v36 }
 0x341   :  { %v695_v42 = vadd.f32 %v1689_v17, %v694_v40  ;;  %754 = vrot.lane.b32.xlu2 %v734_v41, %s1758_s9 }
 0x343   :  { %v706_v3 = vmul.f32 0.01, %v695_v42  ;;  %vm702_vm5 = vcmp.ge.f32.partialorder %v695_v42, 0.0 }
 0x345   :  { %v710_v43 = vsel %vm702_vm5, %v695_v42, %v706_v3 }
 0x346   :  { %v719_v16 = vrot.slane %v710_v43, 4  ;;  %v735_v44 = vrot.slane %v710_v43, 6 }
 0x348   :  { %v736_v45 = vsel %vm205_vm4, %v733_v39, %v735_v44  ;;  %v720_v46 = vsel %vm317_vm3, %v717_v0, %v719_v16  ;;  %v856_v39 = vld [vmem:[%s1826_s24 + $0x60] sm:$0xff] }
 0x349   :  { %v697_v47 = vpop.f32.mrf.mxu3  ;;  %768 = vrot.lane.b32.xlu2 %v710_v43, %s1757_s5  ;;  %v746_v48 = vsel %vm220_vm9, %v736_v45, 0.0  ;;  %v730_v19 = vsel %vm590_vm10, %v720_v46, 0.0  ;;  %962 = vmatpush.msrb.mxu0 %v856_v39 }
 0x34a   :  { %v698_v49 = vadd.f32 %v1689_v17, %v697_v47  ;;  %756 = vrot.lane.b32.xlu1 %v746_v48, %s1758_s9 }
 0x34c   :  { %vm703_vm13 = vcmp.ge.f32.partialorder %v698_v49, 0.0  ;;  %v707_v50 = vmul.f32 0.01, %v698_v49 }
 0x34e   :  { %v711_v51 = vsel %vm703_vm13, %v698_v49, %v707_v50 }
 0x34f   :  { %v721_v52 = vrot.slane %v711_v51, 4  ;;  %v737_v53 = vrot.slane %v711_v51, 6 }
 0x351   :  { %v738_v54 = vsel %vm205_vm4, %v735_v44, %v737_v53  ;;  %v722_v55 = vsel %vm317_vm3, %v719_v16, %v721_v52 }
 0x352   :  { %758 = vrot.lane.b32.xlu0 %v738_v54, %s1758_s9  ;;  %770 = vrot.lane.b32.xlu1 %v711_v51, %s1757_s5 }
 0x39b   :  { %v755_v11 = vpop.permute.xlu2 %754 }
 0x39c   :  { %v777_v14 = vsel %vm426_vm14, %v718_v2, %v755_v11  ;;  %v855_v2 = vld [vmem:[%s1826_s24 + $0x58] sm:$0xff] }
 0x39d   :  { %963 = vmatpush.msrb.mxu0 %v855_v2 }
 0x39f   :  { %964 = vmatpush.msrb.mxu0 %v854_v57  ;;  %v868_v57 = vld [vmem:[%s1836_s6 + $0x40] sm:$0xff] }
 0x3a1   :  { %965 = vmatpush.msrb.mxu0 %v853_v58  ;;  %v867_v58 = vld [vmem:[%s1836_s6 + $0x38] sm:$0xff] }
 0x3a3   :  { %v769_v20 = vpop.permute.xlu2 %768  ;;  %966 = vmatpush.msrb.mxu0 %v852_v59  ;;  %v866_v59 = vld [vmem:[%s1836_s6 + $0x30] sm:$0xff] }
 0x3a5   :  { %v765_v7 = vpop.permute.xlu1 %764 }
 0x3a9   :  { %v753_v6 = vpop.permute.xlu0 %752 }
 0x3aa   :  { %v776_v8 = vsel %vm426_vm14, %v728_v5, %v753_v6  ;;  %v845_v5 = vld [vmem:[%s1826_s24 + $0x8] sm:$0xff]  ;;  %v844_v6 = vld [vmem:[%s1826_s24] sm:$0xff] }
 0x3ab   :  { %v780_v9 = vsel %vm431_vm15, %v776_v8, %v765_v7 }
 0x3ac   :  { %1621 = vmatmul.msk.f32.vlgmr.msrb.gmra.mxu2 %vm439_vm0, %v780_v9 }
 0x3b1   :  { %v767_v15 = vpop.permute.xlu0 %766 }
 0x3b2   :  { %v781_v17 = vsel %vm431_vm15, %v777_v14, %v767_v15 }
 0x3b4   :  { %1622 = vmatmul.msk.f32.gmra.mxu2 %vm439_vm0, %v781_v17 }
 0x3bc   :  { %v757_v18 = vpop.permute.xlu1 %756 }
 0x3bd   :  { %v778_v21 = vsel %vm426_vm14, %v730_v19, %v757_v18 }
 0x3be   :  { %v782_v22 = vsel %vm431_vm15, %v778_v21, %v769_v20 }
 0x3bf   :  { %1623 = vmatmul.msk.f32.gmra.mxu2 %vm439_vm0, %v782_v22 }
 0x3c4   :  { %v759_v24 = vpop.permute.xlu0 %758  ;;  %v771_v25 = vpop.permute.xlu1 %770 }
 0x3c5   :  { %v779_v26 = vsel %vm426_vm14, %v722_v55, %v759_v24 }
 0x3c6   :  { %v783_v27 = vsel %vm431_vm15, %v779_v26, %v771_v25 }
 0x3c7   :  { %1624 = vmatmul.msk.f32.gmra.mxu2 %vm439_vm0, %v783_v27 }
 0x42f   :  { %v816_v29 = vpop.f32.mrf.mxu2 }
 0x430   :  { %v817_v30 = vadd.f32 %v1690_v28, %v816_v29 }
 0x432   :  { %vm828_vm4 = vcmp.ge.f32.partialorder %v817_v30, 0.0  ;;  %v832_v31 = vmul.f32 0.01, %v817_v30 }
 0x434   :  { %v836_v32 = vsel %vm828_vm4, %v817_v30, %v832_v31  ;;  %vm1297_vm4 = vcmask 261120  }
 0x435   :  { %v2185_v34 = vadd.f32 %v836_v32, %v2053_v62 }
 0x437   :  { %924 = vrot.lane.b32.xlu0 %v2185_v34, %s1757_s5  ;;  %v819_v37 = vpop.f32.mrf.mxu2  ;;  %v892_v38 = vrot.slane %v2185_v34, 4 }
 0x438   :  { %v820_v0 = vadd.f32 %v1690_v28, %v819_v37 }
 0x439   :  { %v903_v40 = vsel %vm317_vm3, 0.0, %v892_v38 }
 0x43a   :  { %vm829_vm9 = vcmp.ge.f32.partialorder %v820_v0, 0.0  ;;  %v833_v41 = vmul.f32 0.01, %v820_v0  ;;  %v904_v62 = vsel %vm588_vm8, %v903_v40, 0.0 }
 0x43b   :  { %912 = vrot.lane.b32.xlu2 %v904_v62, %s1758_s9 }
 0x43c   :  { %v837_v42 = vsel %vm829_vm9, %v820_v0, %v833_v41  ;;  %vm1302_vm9 = vcmask 523264  }
 0x43d   :  { %v2199_v3 = vadd.f32 %v837_v42, %v2062_v13 }
 0x43f   :  { %v893_v43 = vrot.slane %v2199_v3, 4 }
 0x441   :  { %v894_v16 = vsel %vm317_vm3, %v892_v38, %v893_v43 }
 0x442   :  { %v822_v44 = vpop.f32.mrf.mxu2  ;;  %914 = vrot.lane.b32.xlu1 %v894_v16, %s1758_s9 }
 0x443   :  { %v823_v45 = vadd.f32 %v1690_v28, %v822_v44  ;;  %926 = vrot.lane.b32.xlu2 %v2199_v3, %s1757_s5 }
 0x445   :  { %vm830_vm1 = vcmp.ge.f32.partialorder %v823_v45, 0.0  ;;  %v834_v46 = vmul.f32 0.01, %v823_v45 }
 0x447   :  { %v838_v47 = vsel %vm830_vm1, %v823_v45, %v834_v46  ;;  %vm1310_vm1 = vcmask 785408  }
 0x448   :  { %v2207_v48 = vadd.f32 %v838_v47, %v2069_v23 }
 0x44a   :  { %v825_v13 = vpop.f32.mrf.mxu2  ;;  %928 = vrot.lane.b32.xlu1 %v2207_v48, %s1757_s5  ;;  %v895_v49 = vrot.slane %v2207_v48, 4 }
 0x44b   :  { %v826_v50 = vadd.f32 %v1690_v28, %v825_v13  ;;  %v1691_v28 = vld [vmem:[%s1831_s30] ss:$0 sm:$0xff]  ;;  %s2445_s30 = sld [smem:[#allocation14_spill]] }
 0x44c   :  { %v896_v51 = vsel %vm317_vm3, %v893_v43, %v895_v49 }
 0x44d   :  { %vm831_vm2 = vcmp.ge.f32.partialorder %v826_v50, 0.0  ;;  %v835_v52 = vmul.f32 0.01, %v826_v50  ;;  %v906_v53 = vsel %vm590_vm10, %v896_v51, 0.0 }
 0x44e   :  { %916 = vrot.lane.b32.xlu0 %v906_v53, %s1758_s9  ;;  %v872_v53 = vld [vmem:[%s1836_s6 + $0x60] sm:$0xff] }
 0x44f   :  { %v839_v23 = vsel %vm831_vm2, %v826_v50, %v835_v52  ;;  %v874_v52 = vld [vmem:[%s1836_s6 + $0x70] sm:$0xff] }
 0x450   :  { %v2217_v54 = vadd.f32 %v839_v23, %v2078_v33  ;;  %v851_v33 = vld [vmem:[%s1826_s24 + $0x38] sm:$0xff]  ;;  %1075 = vmatpush.msrb.mxu1 %v874_v52  ;;  %v1128_v52 = vld [vmem:[%s2439_s21 + $0x48] sm:$0xff]  ;;  %s2444_s24 = sld [smem:[#allocation11_spill]] }
 0x451   :  { %967 = vmatpush.msrb.mxu0 %v851_v33  ;;  %v871_v23 = vld [vmem:[%s1836_s6 + $0x58] sm:$0xff]  ;;  %v865_v33 = vld [vmem:[%s1836_s6 + $0x28] sm:$0xff] }
 0x452   :  { %v897_v55 = vrot.slane %v2217_v54, 4  ;;  %1076 = vmatpush.msrb.mxu1 %v873_v12  ;;  %v1127_v12 = vld [vmem:[%s2439_s21 + $0x40] sm:$0xff] }
 0x453   :  { %968 = vmatpush.msrb.mxu0 %v850_v60  ;;  %v864_v60 = vld [vmem:[%s1836_s6 + $0x20] sm:$0xff] }
 0x454   :  { %v898_v56 = vsel %vm317_vm3, %v895_v49, %v897_v55  ;;  %1077 = vmatpush.msrb.mxu1 %v872_v53  ;;  %v870_v55 = vld [vmem:[%s1836_s6 + $0x50] sm:$0xff] }
 0x455   :  { %918 = vrot.lane.b32.xlu2 %v898_v56, %s1758_s9  ;;  %969 = vmatpush.msrb.mxu0 %v849_v61  ;;  %v869_v56 = vld [vmem:[%s1836_s6 + $0x48] sm:$0xff]  ;;  %v863_v61 = vld [vmem:[%s1836_s6 + $0x18] sm:$0xff]  ;;  %v1125_v53 = vld [vmem:[%s2439_s21 + $0x30] sm:$0xff] }
 0x456   :  { %930 = vrot.lane.b32.xlu0 %v2217_v54, %s1757_s5  ;;  %1078 = vmatpush.msrb.mxu1 %v871_v23  ;;  %v1124_v23 = vld [vmem:[%s2439_s21 + $0x28] sm:$0xff] }
 0x457   :  { %970 = vmatpush.msrb.mxu0 %v848_v63  ;;  %v862_v63 = vld [vmem:[%s1836_s6 + $0x10] sm:$0xff] }
 0x458   :  { %1079 = vmatpush.msrb.mxu1 %v870_v55  ;;  %v1123_v55 = vld [vmem:[%s2439_s21 + $0x20] sm:$0xff] }
 0x459   :  { %971 = vmatpush.msrb.mxu0 %v847_v1  ;;  %v861_v1 = vld [vmem:[%s1836_s6 + $0x8] sm:$0xff] }
 0x45a   :  { %1080 = vmatpush.msrb.mxu1 %v869_v56  ;;  %v1122_v56 = vld [vmem:[%s2439_s21 + $0x18] sm:$0xff] }
 0x45b   :  { %972 = vmatpush.msrb.mxu0 %v846_v4  ;;  %v860_v4 = vld [vmem:[%s1836_s6] sm:$0xff]  ;;  %s2446_s6 = sld [smem:[#allocation16_spill]] }
 0x45c   :  { %1081 = vmatpush.msrb.mxu1 %v868_v57  ;;  %v1121_v57 = vld [vmem:[%s2439_s21 + $0x10] sm:$0xff] }
 0x45d   :  { %973 = vmatpush.msrb.mxu0 %v845_v5 }
 0x45e   :  { %1082 = vmatpush.msrb.mxu1 %v867_v58  ;;  %v1120_v58 = vld [vmem:[%s2439_s21 + $0x8] sm:$0xff] }
 0x45f   :  { %974 = vmatpush.msrb.mxu0 %v844_v6 }
 0x460   :  { %1083 = vmatpush.msrb.mxu1 %v866_v59  ;;  %v1119_v59 = vld [vmem:[%s2439_s21] sm:$0xff] }
 0x462   :  { %1084 = vmatpush.msrb.mxu1 %v865_v33 }
 0x464   :  { %1085 = vmatpush.msrb.mxu1 %v864_v60 }
 0x466   :  { %1086 = vmatpush.msrb.mxu1 %v863_v61 }
 0x468   :  { %1087 = vmatpush.msrb.mxu1 %v862_v63 }
 0x46a   :  { %1088 = vmatpush.msrb.mxu1 %v861_v1 }
 0x46c   :  { %1089 = vmatpush.msrb.mxu1 %v860_v4 }
 0x495   :  { %v913_v7 = vpop.permute.xlu2 %912 }
 0x496   :  { %v936_v8 = vsel %vm426_vm14, 0.0, %v913_v7 }
 0x49d   :  { %v927_v15 = vpop.permute.xlu2 %926 }
 0x4a9   :  { %v925_v9 = vpop.permute.xlu0 %924 }
 0x4aa   :  { %v940_v11 = vsel %vm431_vm15, %v936_v8, %v925_v9  ;;  %v1152_v9 = vld [vmem:[%s2437_s13 + $0x20] sm:$0xff] }
 0x4ab   :  { %1625 = vmatmul.msk.f32.vlgmr.msrb.gmra.mxu0 %vm439_vm0, %v940_v11 }
 0x4ac   :  { %1386 = vmatpush.msra.mxu0 %v1152_v9 }
 0x4af   :  { %v919_v24 = vpop.permute.xlu2 %918 }
 0x4b0   :  { %v939_v25 = vsel %vm426_vm14, %v2207_v48, %v919_v24 }
 0x4b4   :  { %v915_v14 = vpop.permute.xlu1 %914 }
 0x4b5   :  { %v937_v17 = vsel %vm426_vm14, %v2185_v34, %v915_v14 }
 0x4b6   :  { %v941_v18 = vsel %vm431_vm15, %v937_v17, %v927_v15 }
 0x4b7   :  { %1626 = vmatmul.msk.f32.gmra.mxu0 %vm439_vm0, %v941_v18 }
 0x4bc   :  { %v929_v20 = vpop.permute.xlu1 %928 }
 0x4c0   :  { %v917_v19 = vpop.permute.xlu0 %916 }
 0x4c1   :  { %v938_v21 = vsel %vm426_vm14, 0.0, %v917_v19 }
 0x4c2   :  { %v942_v22 = vsel %vm431_vm15, %v938_v21, %v929_v20 }
 0x4c3   :  { %1627 = vmatmul.msk.f32.gmra.mxu0 %vm439_vm0, %v942_v22 }
 0x4c8   :  { %v931_v26 = vpop.permute.xlu0 %930 }
 0x4c9   :  { %v943_v27 = vsel %vm431_vm15, %v939_v25, %v931_v26 }
 0x4cb   :  { %1628 = vmatmul.msk.f32.gmra.mxu0 %vm439_vm0, %v943_v27  ;;  %v1151_v27 = vld [vmem:[%s2437_s13 + $0x18] sm:$0xff] }
 0x4cc   :  { %1387 = vmatpush.msra.mxu0 %v1151_v27  ;;  %v1144_v27 = vld [vmem:[%s2441_s3 + $0x48] sm:$0xff] }
 0x528   :  { %v976_v29 = vpop.f32.mrf.mxu0 }
 0x529   :  { %v977_v30 = vadd.f32 %v1691_v28, %v976_v29  ;;  %v1149_v29 = vld [vmem:[%s2437_s13 + $0x8] sm:$0xff] }
 0x52b   :  { %v992_v31 = vmul.f32 0.01, %v977_v30  ;;  %vm988_vm6 = vcmp.ge.f32.partialorder %v977_v30, 0.0 }
 0x52d   :  { %v2250_v32 = vsel %vm988_vm6, %v977_v30, %v992_v31  ;;  %v1148_v30 = vld [vmem:[%s2437_s13] sm:$0xff]  ;;  %v1759_v31 = vmov 0.0  }
 0x52e   :  { %v1007_v35 = vrot.slane %v2250_v32, 4  ;;  %1039 = vrot.lane.b32.xlu2 %v2250_v32, %s1757_s5 }
 0x530   :  { %v1018_v36 = vsel %vm317_vm3, 0.0, %v1007_v35 }
 0x531   :  { %v1019_v37 = vsel %vm588_vm8, %v1018_v36, 0.0 }
 0x532   :  { %1027 = vrot.lane.b32.xlu1 %v1019_v37, %s1758_s9 }
 0x534   :  { %v979_v38 = vpop.f32.mrf.mxu0 }
 0x535   :  { %v980_v0 = vadd.f32 %v1691_v28, %v979_v38 }
 0x537   :  { %v993_v39 = vmul.f32 0.01, %v980_v0  ;;  %vm989_vm7 = vcmp.ge.f32.partialorder %v980_v0, 0.0 }
 0x539   :  { %v997_v40 = vsel %vm989_vm7, %v980_v0, %v993_v39  ;;  %v1133_v39 = vld [vmem:[%s2439_s21 + $0x70] sm:$0xff] }
 0x53a   :  { %1041 = vrot.lane.b32.xlu1 %v997_v40, %s1757_s5  ;;  %v1008_v41 = vrot.slane %v997_v40, 4  ;;  %v1132_v40 = vld [vmem:[%s2439_s21 + $0x68] sm:$0xff]  ;;  %1221 = vmatpush.msrb.mxu3 %v1133_v39 }
 0x53c   :  { %v1009_v62 = vsel %vm317_vm3, %v1007_v35, %v1008_v41  ;;  %1222 = vmatpush.msrb.mxu3 %v1132_v40 }
 0x53d   :  { %1029 = vrot.lane.b32.xlu0 %v1009_v62, %s1758_s9 }
 0x540   :  { %v982_v2 = vpop.f32.mrf.mxu0 }
 0x541   :  { %v983_v42 = vadd.f32 %v1691_v28, %v982_v2 }
 0x543   :  { %v994_v43 = vmul.f32 0.01, %v983_v42  ;;  %vm990_vm11 = vcmp.ge.f32.partialorder %v983_v42, 0.0 }
 0x545   :  { %v2262_v10 = vsel %vm990_vm11, %v983_v42, %v994_v43 }
 0x546   :  { %1043 = vrot.lane.b32.xlu0 %v2262_v10, %s1757_s5  ;;  %v1010_v16 = vrot.slane %v2262_v10, 4 }
 0x548   :  { %v985_v44 = vpop.f32.mrf.mxu0  ;;  %v1011_v45 = vsel %vm317_vm3, %v1008_v41, %v1010_v16 }
 0x549   :  { %v986_v46 = vadd.f32 %v1691_v28, %v985_v44  ;;  %v1021_v47 = vsel %vm590_vm10, %v1011_v45, 0.0  ;;  %v1150_v28 = vld [vmem:[%s2437_s13 + $0x10] sm:$0xff] }
 0x54a   :  { %1031 = vrot.lane.b32.xlu2 %v1021_v47, %s1758_s9  ;;  %1388 = vmatpush.msra.mxu0 %v1150_v28  ;;  %v1143_v28 = vld [vmem:[%s2441_s3 + $0x40] sm:$0xff] }
 0x54b   :  { %vm991_vm8 = vcmp.ge.f32.partialorder %v986_v46, 0.0  ;;  %v995_v13 = vmul.f32 0.01, %v986_v46 }
 0x54c   :  { %1389 = vmatpush.msra.mxu0 %v1149_v29 }
 0x54d   :  { %v999_v49 = vsel %vm991_vm8, %v986_v46, %v995_v13  ;;  %vm1436_vm8 = vcmask 1041409  }
 0x54e   :  { %v1012_v50 = vrot.slane %v999_v49, 4  ;;  %1169 = vrot.lane.b32.xlu0 %v1759_v31, %s1758_s9  ;;  %1390 = vmatpush.msra.mxu0 %v1148_v30 }
 0x550   :  { %v1013_v51 = vsel %vm317_vm3, %v1010_v16, %v1012_v50  ;;  %v1130_v50 = vld [vmem:[%s2439_s21 + $0x58] sm:$0xff] }
 0x551   :  { %1033 = vrot.lane.b32.xlu1 %v1013_v51, %s1758_s9  ;;  %v1129_v51 = vld [vmem:[%s2439_s21 + $0x50] sm:$0xff] }
 0x552   :  { %1045 = vrot.lane.b32.xlu2 %v999_v49, %s1757_s5 }
 0x588   :  { %v1040_v6 = vpop.permute.xlu2 %1039 }
 0x5a4   :  { %v1028_v5 = vpop.permute.xlu1 %1027  ;;  %v1032_v18 = vpop.permute.xlu2 %1031 }
 0x5a5   :  { %v1051_v7 = vsel %vm426_vm14, 0.0, %v1028_v5  ;;  %v1053_v19 = vsel %vm426_vm14, 0.0, %v1032_v18 }
 0x5a6   :  { %v1055_v8 = vsel %vm431_vm15, %v1051_v7, %v1040_v6 }
 0x5a7   :  { %1629 = vmatmul.msk.f32.vlgmr.msrb.gmra.mxu1 %vm439_vm0, %v1055_v8 }
 0x5ac   :  { %v1042_v14 = vpop.permute.xlu1 %1041  ;;  %v1046_v24 = vpop.permute.xlu2 %1045 }
 0x5af   :  { %v1030_v11 = vpop.permute.xlu0 %1029 }
 0x5b0   :  { %v1052_v15 = vsel %vm426_vm14, %v2250_v32, %v1030_v11  ;;  %v1692_v32 = vld [vmem:[%s2438_s17] ss:$0 sm:$0xff] }
 0x5b1   :  { %v1056_v17 = vsel %vm431_vm15, %v1052_v15, %v1042_v14 }
 0x5b2   :  { %1630 = vmatmul.msk.f32.gmra.mxu1 %vm439_vm0, %v1056_v17 }
 0x5b8   :  { %v1044_v20 = vpop.permute.xlu0 %1043 }
 0x5b9   :  { %v1057_v21 = vsel %vm431_vm15, %v1053_v19, %v1044_v20  ;;  %v1694_v19 = vld [vmem:[%s2440_s25] ss:$0 sm:$0xff] }
 0x5ba   :  { %1631 = vmatmul.msk.f32.gmra.mxu1 %vm439_vm0, %v1057_v21 }
 0x5c0   :  { %v1170_v33 = vpop.permute.xlu0 %1169 }
 0x5c1   :  { %v1197_v60 = vsel %vm426_vm14, 0.0, %v1170_v33  ;;  %v1695_v33 = vld [vmem:[%s2443_s19] ss:$0 sm:$0xff] }
 0x5c3   :  { %v1034_v22 = vpop.permute.xlu1 %1033 }
 0x5c4   :  { %v1054_v25 = vsel %vm426_vm14, %v2262_v10, %v1034_v22 }
 0x5c5   :  { %v1058_v26 = vsel %vm431_vm15, %v1054_v25, %v1046_v24  ;;  %v1146_v25 = vld [vmem:[%s2441_s3 + $0x58] sm:$0xff] }
 0x5c6   :  { %1632 = vmatmul.msk.f32.gmra.mxu1 %vm439_vm0, %v1058_v26  ;;  %v1145_v26 = vld [vmem:[%s2441_s3 + $0x50] sm:$0xff]  ;;  %1327 = vmatpush.msra.mxu2 %v1146_v25 }
 0x5c8   :  { %1328 = vmatpush.msra.mxu2 %v1145_v26 }
 0x5ca   :  { %1329 = vmatpush.msra.mxu2 %v1144_v27  ;;  %v1462_v27 = vld [vmem:[%s2445_s30 + $0x8] sm:$0xff] }
 0x5cc   :  { %1330 = vmatpush.msra.mxu2 %v1143_v28 }
 0x624   :  { %v1091_v35 = vpop.f32.mrf.mxu1 }
 0x625   :  { %v1092_v36 = vadd.f32 %v1692_v32, %v1091_v35 }
 0x627   :  { %vm1103_vm3 = vcmp.ge.f32.partialorder %v1092_v36, 0.0  ;;  %v1107_v37 = vmul.f32 0.01, %v1092_v36 }
 0x629   :  { %v1111_v38 = vsel %vm1103_vm3, %v1092_v36, %v1107_v37  ;;  %vm1556_vm3 = vcmask 41984  }
 0x62a   :  { %v1115_v0 = vadd.f32 %v1111_v38, %v2185_v34 }
 0x62c   :  { %1171 = vrot.lane.b32.xlu2 %v1115_v0, %s1758_s9  ;;  %1185 = vrot.lane.b32.xlu1 %v1115_v0, %s1757_s5 }
 0x62d   :  { %1641 = vmatmul.msk.f32.vlgmr.msra.gmra.mxu0 %vm426_vm14, %v1115_v0 }
 0x62f   :  { %v1094_v41 = vpop.f32.mrf.mxu1 }
 0x630   :  { %v1095_v62 = vadd.f32 %v1692_v32, %v1094_v41 }
 0x632   :  { %vm1104_vm10 = vcmp.ge.f32.partialorder %v1095_v62, 0.0  ;;  %v1108_v2 = vmul.f32 0.01, %v1095_v62 }
 0x634   :  { %1173 = vrot.lane.b32.xlu1 %v1759_v31, %s1758_s9  ;;  %v1112_v42 = vsel %vm1104_vm10, %v1095_v62, %v1108_v2  ;;  %v1141_v2 = vld [vmem:[%s2441_s3 + $0x30] sm:$0xff] }
 0x635   :  { %v1116_v34 = vadd.f32 %v1112_v42, %v2199_v3  ;;  %v1140_v42 = vld [vmem:[%s2441_s3 + $0x28] sm:$0xff] }
 0x637   :  { %v1097_v43 = vpop.f32.mrf.mxu1  ;;  %1187 = vrot.lane.b32.xlu0 %v1116_v34, %s1757_s5  ;;  %1642 = vmatmul.msk.f32.gmra.mxu0 %vm426_vm14, %v1116_v34  ;;  %v1139_v34 = vld [vmem:[%s2441_s3 + $0x20] sm:$0xff] }
 0x638   :  { %v1098_v10 = vadd.f32 %v1692_v32, %v1097_v43  ;;  %v1138_v43 = vld [vmem:[%s2441_s3 + $0x18] sm:$0xff] }
 0x63a   :  { %vm1105_vm12 = vcmp.ge.f32.partialorder %v1098_v10, 0.0  ;;  %v1109_v16 = vmul.f32 0.01, %v1098_v10 }
 0x63c   :  { %v1113_v44 = vsel %vm1105_vm12, %v1098_v10, %v1109_v16  ;;  %v1137_v10 = vld [vmem:[%s2441_s3 + $0x10] sm:$0xff]  ;;  %v1136_v16 = vld [vmem:[%s2441_s3 + $0x8] sm:$0xff] }
 0x63d   :  { %v1117_v45 = vadd.f32 %v1113_v44, %v2207_v48  ;;  %v1131_v48 = vld [vmem:[%s2439_s21 + $0x60] sm:$0xff] }
 0x63e   :  { %1223 = vmatpush.msrb.mxu3 %v1131_v48  ;;  %v1135_v44 = vld [vmem:[%s2441_s3] sm:$0xff] }
 0x63f   :  { %1189 = vrot.lane.b32.xlu2 %v1117_v45, %s1757_s5  ;;  %1175 = vrot.lane.b32.xlu0 %v1117_v45, %s1758_s9 }
 0x640   :  { %1643 = vmatmul.msk.f32.gmra.mxu0 %vm426_vm14, %v1117_v45  ;;  %1224 = vmatpush.msrb.mxu3 %v1130_v50 }
 0x642   :  { %1225 = vmatpush.msrb.mxu3 %v1129_v51 }
 0x643   :  { %v1100_v3 = vpop.f32.mrf.mxu1 }
 0x644   :  { %v1101_v46 = vadd.f32 %v1692_v32, %v1100_v3  ;;  %1226 = vmatpush.msrb.mxu3 %v1128_v52  ;;  %v1142_v32 = vld [vmem:[%s2441_s3 + $0x38] sm:$0xff] }
 0x645   :  { %1331 = vmatpush.msra.mxu2 %v1142_v32 }
 0x646   :  { %vm1106_vm5 = vcmp.ge.f32.partialorder %v1101_v46, 0.0  ;;  %v1110_v47 = vmul.f32 0.01, %v1101_v46  ;;  %1227 = vmatpush.msrb.mxu3 %v1127_v12 }
 0x647   :  { %1269 = vrot.lane.b32.xlu2 %v1759_v31, %s1760_s29  ;;  %1332 = vmatpush.msra.mxu2 %v1141_v2 }
 0x648   :  { %v1114_v13 = vsel %vm1106_vm5, %v1101_v46, %v1110_v47 }
 0x649   :  { %v1118_v49 = vadd.f32 %v1114_v13, %v2217_v54  ;;  %v1126_v54 = vld [vmem:[%s2439_s21 + $0x38] sm:$0xff]  ;;  %1333 = vmatpush.msra.mxu2 %v1140_v42 }
 0x64a   :  { %1228 = vmatpush.msrb.mxu3 %v1126_v54 }
 0x64b   :  { %1191 = vrot.lane.b32.xlu1 %v1118_v49, %s1757_s5  ;;  %1644 = vmatmul.msk.f32.gmra.mxu0 %vm426_vm14, %v1118_v49 }
 0x64c   :  { %1229 = vmatpush.msrb.mxu3 %v1125_v53  ;;  %1334 = vmatpush.msra.mxu2 %v1139_v34 }
 0x64e   :  { %1230 = vmatpush.msrb.mxu3 %v1124_v23  ;;  %1335 = vmatpush.msra.mxu2 %v1138_v43 }
 0x650   :  { %1231 = vmatpush.msrb.mxu3 %v1123_v55  ;;  %1336 = vmatpush.msra.mxu2 %v1137_v10 }
 0x652   :  { %1232 = vmatpush.msrb.mxu3 %v1122_v56  ;;  %1337 = vmatpush.msra.mxu2 %v1136_v16 }
 0x654   :  { %1233 = vmatpush.msrb.mxu3 %v1121_v57  ;;  %1338 = vmatpush.msra.mxu2 %v1135_v44  ;;  %v1429_v57 = vld [vmem:[%s2442_s14 + $0x18] sm:$0xff] }
 0x655   :  { %1452 = vmatpush.msra.mxu1 %v1429_v57 }
 0x656   :  { %1234 = vmatpush.msrb.mxu3 %v1120_v58 }
 0x658   :  { %1235 = vmatpush.msrb.mxu3 %v1119_v59 }
 0x686   :  { %v1172_v1 = vpop.permute.xlu2 %1171 }
 0x687   :  { %v1198_v4 = vsel %vm426_vm14, 0.0, %v1172_v1 }
 0x699   :  { %v1190_v9 = vpop.permute.xlu2 %1189 }
 0x69e   :  { %v1186_v61 = vpop.permute.xlu1 %1185 }
 0x69f   :  { %v1201_v63 = vsel %vm431_vm15, %v1197_v60, %v1186_v61 }
 0x6a0   :  { %1633 = vmatmul.msk.f32.vlgmr.msrb.gmra.mxu3 %vm439_vm0, %v1201_v63 }
 0x6a1   :  { %v1270_v45 = vpop.permute.xlu2 %1269 }
 0x6a2   :  { %v1298_v3 = vsel %vm1297_vm4, 0.0, %v1270_v45 }
 0x6a6   :  { %v1174_v7 = vpop.permute.xlu1 %1173 }
 0x6a7   :  { %v1199_v8 = vsel %vm426_vm14, 0.0, %v1174_v7 }
 0x6a8   :  { %v1203_v11 = vsel %vm431_vm15, %v1199_v8, %v1190_v9  ;;  %v1426_v8 = vld [vmem:[%s2442_s14] sm:$0xff] }
 0x6a9   :  { %v1188_v5 = vpop.permute.xlu0 %1187  ;;  %v1693_v9 = vld [vmem:[%s2444_s24] ss:$0 sm:$0xff] }
 0x6aa   :  { %v1202_v6 = vsel %vm431_vm15, %v1198_v4, %v1188_v5  ;;  %v1392_v59 = vpop.f32.mrf.mxu0  ;;  %v1428_v5 = vld [vmem:[%s2442_s14 + $0x10] sm:$0xff] }
 0x6ab   :  { %1634 = vmatmul.msk.f32.gmra.mxu3 %vm439_vm0, %v1202_v6  ;;  %v1427_v6 = vld [vmem:[%s2442_s14 + $0x8] sm:$0xff]  ;;  %1453 = vmatpush.msra.mxu1 %v1428_v5  ;;  %v1698_v5 = vld [vmem:[%s1901_s12] ss:$0 sm:$0xff]  ;;  %s1714_s12 = scalar_lea.hbm %s1713_s18, 2 }
 0x6ac   :  { %p1715_p0 = scmp.ne.s32.totalorder %s1713_s18, %s1714_s12  ;;  %p1718_p2 = scmp.lt.s32.totalorder %s1716_s22, %s1714_s12 }
 0x6ad   :  { %1454 = vmatpush.msra.mxu1 %v1427_v6 }
 0x6ae   :  { %p1719_p3 = por %p1718_p2, %p1717_p1 }
 0x6af   :  { %1455 = vmatpush.msra.mxu1 %v1426_v8 }
 0x6b0   :  { %p1720_p4 = pnand %p1719_p3, %p1715_p0 }
 0x6b1   :  { %v1176_v14 = vpop.permute.xlu0 %1175 }
 0x6b2   :  { %v1200_v15 = vsel %vm426_vm14, 0.0, %v1176_v14 }
 0x6b3   :  { %1635 = vmatmul.msk.f32.gmra.mxu3 %vm439_vm0, %v1203_v11 }
 0x6b4   :  { %v1395_v1 = vpop.f32.mrf.mxu0 }
 0x6b5   :  { %v1396_v14 = vadd.f32 %v1693_v9, %v1395_v1 }
 0x6bd   :  { %v1192_v17 = vpop.permute.xlu1 %1191 }
 0x6be   :  { %v1204_v18 = vsel %vm431_vm15, %v1200_v15, %v1192_v17  ;;  %v1393_v17 = vadd.f32 %v1693_v9, %v1392_v59  ;;  %v1527_v59 = vld [vmem:[%s1906_s20 + $0x10] sm:$0xff] }
 0x6bf   :  { %1636 = vmatmul.msk.f32.gmra.mxu3 %vm439_vm0, %v1204_v18 }
 0x723   :  { %v1237_v20 = vpop.f32.mrf.mxu3 }
 0x724   :  { %v1238_v21 = vadd.f32 %v1694_v19, %v1237_v20 }
 0x726   :  { %v1253_v22 = vmul.f32 0.01, %v1238_v21  ;;  %vm1249_vm13 = vcmp.ge.f32.partialorder %v1238_v21, 0.0 }
 0x728   :  { %v1257_v24 = vsel %vm1249_vm13, %v1238_v21, %v1253_v22  ;;  %v1464_v21 = vld [vmem:[%s2445_s30 + $0x18] sm:$0xff]  ;;  %v1463_v22 = vld [vmem:[%s2445_s30 + $0x10] sm:$0xff] }
 0x729   :  { %1271 = vrot.lane.b32.xlu1 %v1257_v24, %s1760_s29  ;;  %1285 = vrot.lane.b32.xlu0 %v1257_v24, %s1761_s8  ;;  %v1398_v24 = vpop.f32.mrf.mxu0 }
 0x72a   :  { %1484 = vmatpush.msra.mxu3 %v1464_v21 }
 0x72c   :  { %1485 = vmatpush.msra.mxu3 %v1463_v22 }
 0x72e   :  { %v1240_v29 = vpop.f32.mrf.mxu3  ;;  %1486 = vmatpush.msra.mxu3 %v1462_v27 }
 0x72f   :  { %v1241_v30 = vadd.f32 %v1694_v19, %v1240_v29  ;;  %v1461_v29 = vld [vmem:[%s2445_s30] sm:$0xff] }
 0x730   :  { %1487 = vmatpush.msra.mxu3 %v1461_v29 }
 0x731   :  { %v1254_v35 = vmul.f32 0.01, %v1241_v30  ;;  %vm1250_vm14 = vcmp.ge.f32.partialorder %v1241_v30, 0.0  ;;  %1273 = vrot.lane.b32.xlu0 %v1759_v31, %s1760_s29 }
 0x733   :  { %v1258_v36 = vsel %vm1250_vm14, %v1241_v30, %v1254_v35 }
 0x734   :  { %1287 = vrot.lane.b32.xlu2 %v1258_v36, %s1761_s8  ;;  %v1401_v36 = vpop.f32.mrf.mxu0 }
 0x736   :  { %v1243_v37 = vpop.f32.mrf.mxu3 }
 0x737   :  { %v1244_v38 = vadd.f32 %v1694_v19, %v1243_v37 }
 0x739   :  { %v1255_v0 = vmul.f32 0.01, %v1244_v38  ;;  %vm1251_vm15 = vcmp.ge.f32.partialorder %v1244_v38, 0.0 }
 0x73b   :  { %v1259_v39 = vsel %vm1251_vm15, %v1244_v38, %v1255_v0 }
 0x73c   :  { %1275 = vrot.lane.b32.xlu2 %v1259_v39, %s1760_s29  ;;  %1289 = vrot.lane.b32.xlu1 %v1259_v39, %s1761_s8  ;;  %v1399_v39 = vadd.f32 %v1693_v9, %v1398_v24 }
 0x742   :  { %v1246_v40 = vpop.f32.mrf.mxu3 }
 0x743   :  { %v1247_v41 = vadd.f32 %v1694_v19, %v1246_v40 }
 0x745   :  { %v1256_v31 = vmul.f32 0.01, %v1247_v41  ;;  %vm1252_vm0 = vcmp.ge.f32.partialorder %v1247_v41, 0.0 }
 0x747   :  { %v1260_v62 = vsel %vm1252_vm0, %v1247_v41, %v1256_v31  ;;  %v1402_v41 = vadd.f32 %v1693_v9, %v1401_v36  ;;  %v1699_v9 = vld [vmem:[%s1911_s27] ss:$0 sm:$0xff] }
 0x748   :  { %1291 = vrot.lane.b32.xlu0 %v1260_v62, %s1761_s8 }
 0x78e   :  { %v1288_v48 = vpop.permute.xlu2 %1287 }
 0x796   :  { %v1276_v53 = vpop.permute.xlu2 %1275 }
 0x797   :  { %v1301_v23 = vsel %vm1297_vm4, 0.0, %v1276_v53  ;;  %v1493_v53 = vld [vmem:[%s2446_s6] sm:$0xff] }
 0x79b   :  { %v1286_v46 = vpop.permute.xlu0 %1285  ;;  %v1272_v13 = vpop.permute.xlu1 %1271 }
 0x79c   :  { %v1303_v47 = vsel %vm1302_vm9, %v1298_v3, %v1286_v46  ;;  %v1299_v49 = vsel %vm1297_vm4, 0.0, %v1272_v13 }
 0x79d   :  { %1637 = vmatmul.msk.f32.vlgmr.msra.gmra.mxu2 %vm1310_vm1, %v1303_v47  ;;  %v1304_v50 = vsel %vm1302_vm9, %v1299_v49, %v1288_v48 }
 0x7a3   :  { %v1274_v51 = vpop.permute.xlu0 %1273 }
 0x7a4   :  { %v1300_v52 = vsel %vm1297_vm4, 0.0, %v1274_v51 }
 0x7a5   :  { %1638 = vmatmul.msk.f32.gmra.mxu2 %vm1310_vm1, %v1304_v50 }
 0x7ae   :  { %v1290_v12 = vpop.permute.xlu1 %1289 }
 0x7af   :  { %v1305_v54 = vsel %vm1302_vm9, %v1300_v52, %v1290_v12  ;;  %v1496_v52 = vld [vmem:[%s2446_s6 + $0x18] sm:$0xff]  ;;  %v1495_v12 = vld [vmem:[%s2446_s6 + $0x10] sm:$0xff] }
 0x7b0   :  { %1639 = vmatmul.msk.f32.gmra.mxu2 %vm1310_vm1, %v1305_v54  ;;  %v1494_v54 = vld [vmem:[%s2446_s6 + $0x8] sm:$0xff] }
 0x7b1   :  { %1516 = vmatpush.msrb.mxu2 %v1496_v52 }
 0x7b3   :  { %1517 = vmatpush.msrb.mxu2 %v1495_v12 }
 0x7b5   :  { %1518 = vmatpush.msrb.mxu2 %v1494_v54 }
 0x7b7   :  { %1519 = vmatpush.msrb.mxu2 %v1493_v53 }
 0x7ba   :  { %v1292_v55 = vpop.permute.xlu0 %1291 }
 0x7bb   :  { %v1306_v56 = vsel %vm1302_vm9, %v1301_v23, %v1292_v55  ;;  %v1696_v23 = vld [vmem:[%s2447_s10] ss:$0 sm:$0xff] }
 0x7bc   :  { %1640 = vmatmul.msk.f32.gmra.mxu2 %vm1310_vm1, %v1306_v56 }
 0x820   :  { %v1340_v58 = vpop.f32.mrf.mxu2 }
 0x821   :  { %v1341_v63 = vadd.f32 %v1695_v33, %v1340_v58  ;;  %v1528_v58 = vld [vmem:[%s1906_s20 + $0x18] sm:$0xff] }
 0x822   :  { %1548 = vmatpush.msrb.mxu0 %v1528_v58 }
 0x823   :  { %v1356_v7 = vmul.f32 0.01, %v1341_v63  ;;  %vm1352_vm6 = vcmp.ge.f32.partialorder %v1341_v63, 0.0 }
 0x824   :  { %1549 = vmatpush.msrb.mxu0 %v1527_v59 }
 0x825   :  { %v1360_v15 = vsel %vm1352_vm6, %v1341_v63, %v1356_v7 }
 0x826   :  { %v1404_v20 = vadd.f32 %v1393_v17, %v1360_v15 }
 0x828   :  { %v1343_v60 = vpop.f32.mrf.mxu2  ;;  %v1408_v28 = vsel %vm1297_vm4, %v1404_v20, -inf }
 0x829   :  { %v1344_v61 = vadd.f32 %v1695_v33, %v1343_v60  ;;  %v1525_v60 = vld [vmem:[%s1906_s20] sm:$0xff] }
 0x82b   :  { %v1357_v4 = vmul.f32 0.01, %v1344_v61  ;;  %vm1353_vm2 = vcmp.ge.f32.partialorder %v1344_v61, 0.0 }
 0x82d   :  { %v1361_v11 = vsel %vm1353_vm2, %v1344_v61, %v1357_v4  ;;  %v1697_v61 = vld [vmem:[%s2448_s11] ss:$0 sm:$0xff] }
 0x82e   :  { %v1405_v18 = vadd.f32 %v1396_v14, %v1361_v11 }
 0x830   :  { %v1409_v26 = vsel %vm1297_vm4, %v1405_v18, -inf }
 0x831   :  { %v1410_v30 = vmax.f32 %v1408_v28, %v1409_v26 }
 0x833   :  { %v1346_v19 = vpop.f32.mrf.mxu2  ;;  %v1411_v37 = vrot.slane %v1410_v30, 4 }
 0x834   :  { %v1347_v25 = vadd.f32 %v1695_v33, %v1346_v19 }
 0x835   :  { %v1412_v62 = vmax.f32 %v1410_v30, %v1411_v37 }
 0x836   :  { %v1358_v32 = vmul.f32 0.01, %v1347_v25  ;;  %vm1354_vm7 = vcmp.ge.f32.partialorder %v1347_v25, 0.0 }
 0x837   :  { %v1413_v10 = vrot.slane %v1412_v62, 2 }
 0x838   :  { %v1362_v38 = vsel %vm1354_vm7, %v1347_v25, %v1358_v32 }
 0x839   :  { %v1406_v31 = vadd.f32 %v1399_v39, %v1362_v38  ;;  %v1414_v3 = vmax.f32 %v1412_v62, %v1413_v10 }
 0x83b   :  { %v1417_v34 = vsel %vm1297_vm4, %v1406_v31, -inf  ;;  %v1415_v47 = vrot.slane %v1414_v3, 1 }
 0x83d   :  { %v1416_v48 = vmax.f32 %v1414_v3, %v1415_v47 }
 0x83f   :  { %v1349_v35 = vpop.f32.mrf.mxu2 }
 0x840   :  { %v1350_v0 = vadd.f32 %v1695_v33, %v1349_v35  ;;  %v1526_v33 = vld [vmem:[%s1906_s20 + $0x8] sm:$0xff]  ;;  %s1563_s20 = sshll.u32 %s1762_s15, 4  ;;  %s1564_s20 = int_to_ptr.vmem [resolvable:$true] %s1563_s20 }
 0x841   :  { %1550 = vmatpush.msrb.mxu0 %v1526_v33 }
 0x842   :  { %vm1355_vm11 = vcmp.ge.f32.partialorder %v1350_v0, 0.0  ;;  %v1359_v40 = vmul.f32 0.01, %v1350_v0 }
 0x843   :  { %1551 = vmatpush.msrb.mxu0 %v1525_v60 }
 0x844   :  { %v1363_v2 = vsel %vm1355_vm11, %v1350_v0, %v1359_v40 }
 0x845   :  { %v1407_v42 = vadd.f32 %v1402_v41, %v1363_v2 }
 0x847   :  { %v1418_v43 = vsel %vm1297_vm4, %v1407_v42, -inf }
 0x848   :  { %v1419_v16 = vmax.f32 %v1417_v34, %v1418_v43 }
 0x84a   :  { %v1420_v44 = vrot.slane %v1419_v16, 4 }
 0x84c   :  { %v1421_v45 = vmax.f32 %v1419_v16, %v1420_v44 }
 0x84e   :  { %v1422_v46 = vrot.slane %v1421_v45, 2 }
 0x850   :  { %v1423_v13 = vmax.f32 %v1421_v45, %v1422_v46 }
 0x852   :  { %v1424_v49 = vrot.slane %v1423_v13, 1 }
 0x854   :  { %v1425_v50 = vmax.f32 %v1423_v13, %v1424_v49 }
 0x856   :  { %v1437_v51 = vsel %vm1436_vm8, %v1425_v50, %v1416_v48 }
 0x857   :  { %1645 = vmatmul.msk.f32.vlgmr.msra.gmra.mxu1 %vm1297_vm4, %v1437_v51 }
 0x8d4   :  { %v1457_v55 = vpop.f32.mrf.mxu1 }
 0x8d5   :  { %v1458_v56 = vadd.f32 %v1696_v23, %v1457_v55 }
 0x8d7   :  { %v1460_v57 = vmax.f32 %v1458_v56, 0.0 }
 0x8d9   :  { %1646 = vmatmul.msk.f32.vlgmr.msra.gmra.mxu3 %vm1297_vm4, %v1460_v57 }
 0x95c   :  { %v1489_v63 = vpop.f32.mrf.mxu3 }
 0x95d   :  { %v1490_v1 = vadd.f32 %v1697_v61, %v1489_v63 }
 0x95f   :  { %v1492_v4 = vmax.f32 %v1490_v1, 0.0 }
 0x961   :  { %1647 = vmatmul.msk.f32.vlgmr.msrb.gmra.mxu2 %vm1297_vm4, %v1492_v4 }
 0x9e4   :  { %v1521_v6 = vpop.f32.mrf.mxu2 }
 0x9e5   :  { %v1522_v7 = vadd.f32 %v1698_v5, %v1521_v6 }
 0x9e7   :  { %v1524_v8 = vmax.f32 %v1522_v7, 0.0 }
 0x9e9   :  { %1648 = vmatmul.msk.f32.vlgmr.msrb.gmra.mxu0 %vm1297_vm4, %v1524_v8 }
 0xa66   :  { %v1553_v11 = vpop.f32.mrf.mxu0 }
 0xa67   :  { %v1554_v14 = vadd.f32 %v1699_v9, %v1553_v11 }
 0xa69   :  { %1557 = vst.msk [vmem:[#allocation2] sm:$0x3] %vm1556_vm3, %v1554_v14 }
 0xa6a   :  { %1723 = shalt.err (!%p1720_p4)
}
 0xa6b   :  { %1568 = dma.vmem_to_hbm [thread:$0]  %s1564_s20, 32, %s1566_s16, [#allocation3]  }
 0xa6c   :  { %1724 = dma.done.wait [#allocation3], 32  }
 0xa6d   :  { %1725 = vsyncadd [#allocation3], 4294967264 }
 0xa6e   :  { %1573 = vsyncpa [#allocation3], 1 }

</bundles_post_ra>
